<compile_context>
chip_gen: v7x
topology: tpu7x:2x2x1
jax: 0.10.0
libtpu: 0.0.40
codegen_flags: <defaults>
</compile_context>

<pallas_src>
import math

import jax
import jax.numpy as jnp
from jax import lax
from jax.experimental import pallas as pl
from jax.experimental.pallas import tpu as pltpu  # noqa: F401  (TPU backend assumed)

# ---- small config consistent with the module __init__ --------------------------------
D_MODEL = 32
NHEAD = 4
DIM_FF = 64
NUM_LAYERS = 2
SENT_LEN = 8                 # PyTorch "batch" axis of the encoder (input dim 1)
S0 = 4                       # PyTorch "sequence" axis self-attention runs over (dim 0)
HEAD_DIM = D_MODEL // NHEAD
NTOK = S0 * SENT_LEN         # 32 rows in the flattened activation slab
LN_EPS = 1e-5
LANES = 128                  # lane-dense slab width

# ---- row offsets inside the two packed parameter slabs --------------------------------
# bf16 weight slab (all matmul operands), rows:
W_ONES = 0                                   # (128,128) block-diagonal ones (head row-sums)
W_LAYER0 = NTOK * NHEAD                      # 128
W_LAYER_SZ = D_MODEL + D_MODEL + D_MODEL + DIM_FF   # wqkv + wo + w1 + w2 = 160
# f32 slab (biases / LN params / mask / final linear), rows:
F_BIAS = 0                                   # (32,128) additive attention mask (tiled per head)
F_VEC0 = NTOK                                # 8 rows of 1-D params per layer
F_FLN = F_VEC0 + NUM_LAYERS * 8              # final encoder LayerNorm gamma, beta
F_BFIN = F_FLN + 2                           # (12,32) final Linear bias block
F_WFIN = F_BFIN + 3 * S0                     # (12,32) kron(I_S0, lin_w)


def _layer_norm(x, g, b):
    mu = jnp.mean(x, axis=-1, keepdims=True)
    var = jnp.mean((x - mu) ** 2, axis=-1, keepdims=True)
    return (x - mu) * lax.rsqrt(var + LN_EPS) * g + b


# ------------------------------ fully fused kernel ------------------------------------
def fused_encoder_kernel(x_ref, w_ref, f_ref, o_ref):
    ones_bd = w_ref[W_ONES:W_ONES + NTOK * NHEAD, :]      # (128,128) bf16 head row-sum selector
    bias_w = f_ref[F_BIAS:F_BIAS + NTOK, :]               # (32,128) f32 additive mask (tiled 4x)
    x = x_ref[...]                                        # (NTOK, D) f32, row r = s*SENT_LEN + l

    for layer in range(NUM_LAYERS):                       # static unroll over layers
        wb = W_LAYER0 + layer * W_LAYER_SZ
        wqkv = w_ref[wb:wb + D_MODEL, :]                            # (32,128) bf16, Q pre-scaled
        wo = w_ref[wb + D_MODEL:wb + 2 * D_MODEL, :]                # (32,128) bf16, lanes>=32 zero
        w1 = w_ref[wb + 2 * D_MODEL:wb + 3 * D_MODEL, :]            # (32,128) bf16, lanes>=64 zero
        w2 = w_ref[wb + 3 * D_MODEL:wb + 3 * D_MODEL + DIM_FF, :]   # (64,128) bf16, lanes>=32 zero
        vec = f_ref[F_VEC0 + 8 * layer:F_VEC0 + 8 * layer + 8, :]   # (8,128) f32 packed 1-D params
        bqkv = vec[0:1, :]                   # (1,128), pad lanes zero, Q part pre-scaled
        bo = vec[1:2, :D_MODEL]
        g1 = vec[2:3, :D_MODEL]
        b1n = vec[3:4, :D_MODEL]
        b1 = vec[4:5, :]                     # (1,128), lanes>=64 zero
        b2 = vec[5:6, :D_MODEL]
        g2 = vec[6:7, :D_MODEL]
        b2n = vec[7:8, :D_MODEL]

        # ---- attention (all 32 rows batched; mask restricts to same sentence idx) ----
        qkv = jnp.dot(x.astype(jnp.bfloat16), wqkv,
                      preferred_element_type=jnp.float32) + bqkv    # (32,128), lanes>=96 zero
        q = qkv[:, :D_MODEL]                                        # scale already folded in
        k = qkv[:, D_MODEL:2 * D_MODEL]
        v = qkv[:, 2 * D_MODEL:3 * D_MODEL].astype(jnp.bfloat16)

        s_blk, vw_blk = [], []
        for h in range(NHEAD):                                      # static unroll over heads
            lo = h * HEAD_DIM
            s_blk.append(lax.dot_general(
                q[:, lo:lo + HEAD_DIM], k[:, lo:lo + HEAD_DIM],
                (((1,), (1,)), ((), ())), preferred_element_type=jnp.float32))  # (32,32)
            vw_blk.append(jnp.dot(v[:, lo:lo + HEAD_DIM], wo[lo:lo + HEAD_DIM, :],
                                  preferred_element_type=jnp.float32))          # (32,128)

        # Lane-batched softmax over all 4 heads at once.
        s_all = jnp.concatenate(s_blk, axis=1) + bias_w             # (32,128)
        # One shared per-row max across heads is exact (softmax shift-invariance per
        # row); masked entries (-1e30) can never be the max, so exp() stays finite.
        m = jnp.max(s_all, axis=-1, keepdims=True)                  # (32,1)
        p = jnp.exp(s_all - m)                                      # one full-width exp
        # Per-head row sums, already broadcast to each head's 32-lane block.
        denom = jnp.dot(p.astype(jnp.bfloat16), ones_bd,
                        preferred_element_type=jnp.float32)         # (32,128)
        p = (p * pl.reciprocal(denom, approx=True)).astype(jnp.bfloat16)
        # attn = sum_h softmax_h @ (V_h @ Wo_h): one 128-deep matmul.
        vw = jnp.concatenate(vw_blk, axis=0).astype(jnp.bfloat16)   # (128,128)
        attn = jnp.dot(p, vw, preferred_element_type=jnp.float32)[:, :D_MODEL] + bo

        # ---- post-norm residual blocks (PyTorch norm_first=False) --------------------
        h1 = _layer_norm(x + attn, g1, b1n)
        ff = jnp.maximum(jnp.dot(h1.astype(jnp.bfloat16), w1,
                                 preferred_element_type=jnp.float32) + b1, 0.0)  # (32,128)
        ff2 = jnp.dot(ff[:, :DIM_FF].astype(jnp.bfloat16), w2,
                      preferred_element_type=jnp.float32)[:, :D_MODEL] + b2
        x = _layer_norm(h1 + ff2, g2, b2n)

    # ---- final encoder LayerNorm + Linear(sent_len, 3) as one (12,32)@(32,32) matmul --
    fln = f_ref[F_FLN:F_FLN + 2, :]
    bfin = f_ref[F_BFIN:F_BFIN + 3 * S0, :][:, :D_MODEL]            # (12,32)
    wfin = f_ref[F_WFIN:F_WFIN + 3 * S0, :][:, :D_MODEL]            # (12,32) kron(I_S0, lin_w)
    yn = _layer_norm(x, fln[0:1, :D_MODEL], fln[1:2, :D_MODEL])
    o_ref[...] = jnp.dot(wfin, yn, preferred_element_type=jnp.float32) + bfin


# ------------------------------------ wrapper ------------------------------------------
@jax.jit
def forward(x, packed):
    """x: (S0, SENT_LEN, D_MODEL) -> (S0, 3, D_MODEL)."""
    x2 = x.reshape(NTOK, D_MODEL)          # contiguous merge: free, no transpose
    out = pl.pallas_call(
        fused_encoder_kernel,
        out_shape=jax.ShapeDtypeStruct((3 * S0, D_MODEL), jnp.float32),
    )(x2, packed["wslab"], packed["fslab"])
    return out.reshape(S0, 3, D_MODEL)     # row index s*3+o -> pure metadata reshape


def pack_params(layer_params, final_params):
    """One-time packing into two lane-dense (.,128) slabs: bf16 matmul weights + f32 rest."""
    scale = 1.0 / math.sqrt(HEAD_DIM)
    qscale = jnp.concatenate([jnp.full((D_MODEL,), scale, jnp.float32),
                              jnp.ones((2 * D_MODEL,), jnp.float32)])

    def pad_lanes(a):
        return jnp.pad(a, ((0, 0), (0, LANES - a.shape[1])))

    def row(v):
        return jnp.pad(v, (0, LANES - v.shape[0]))[None, :]

    # bf16 matmul-weight slab (one DMA).
    wrows = [jnp.kron(jnp.eye(NHEAD, dtype=jnp.float32),
                      jnp.ones((D_MODEL, D_MODEL), jnp.float32))]   # (128,128) ones_bd
    for p in layer_params:
        wrows += [pad_lanes(p["wqkv"] * qscale[None, :]),           # 1/sqrt(hd) folded into Q cols
                  pad_lanes(p["wo"]), pad_lanes(p["w1"]), pad_lanes(p["w2"])]
    wslab = jnp.concatenate(wrows, axis=0).astype(jnp.bfloat16)     # (448,128)

    # f32 slab: mask, biases, LayerNorm params, final Linear.
    rid = jnp.arange(NTOK, dtype=jnp.int32)[:, None] % SENT_LEN
    cid = jnp.arange(NTOK, dtype=jnp.int32)[None, :] % SENT_LEN
    bias = jnp.where(rid == cid, 0.0, -1e30).astype(jnp.float32)    # (32,32), exact in f32
    frows = [jnp.tile(bias, (1, NHEAD))]                            # (32,128)
    for p in layer_params:
        frows += [row(p["bqkv"] * qscale), row(p["bo"]), row(p["g1"]), row(p["b1n"]),
                  row(p["b1"]), row(p["b2"]), row(p["g2"]), row(p["b2n"])]
    frows += [row(final_params["gamma"]), row(final_params["beta"])]
    frows.append(pad_lanes(jnp.tile(final_params["lin_b"], S0)[:, None]
                           * jnp.ones((1, D_MODEL), jnp.float32)))  # (12,128) bias per out row
    frows.append(pad_lanes(jnp.kron(jnp.eye(S0, dtype=jnp.float32),
                                    final_params["lin_w"])))        # (12,128) kron(I_S0, lin_w)
    fslab = jnp.concatenate(frows, axis=0)
    fslab = jnp.pad(fslab, ((0, (-fslab.shape[0]) % 8), (0, 0)))    # (80,128)
    return {"wslab": wslab, "fslab": fslab}


# ------------------------------- pure-JAX reference ------------------------------------
def reference_forward(x, layer_params, final_params):
    y = x
    scale = 1.0 / math.sqrt(HEAD_DIM)
    for p in layer_params:
        qkv = y @ p["wqkv"] + p["bqkv"]
        q, k, v = jnp.split(qkv, 3, axis=-1)
        q = q.reshape(S0, SENT_LEN, NHEAD, HEAD_DIM) * scale
        k = k.reshape(S0, SENT_LEN, NHEAD, HEAD_DIM)
        v = v.reshape(S0, SENT_LEN, NHEAD, HEAD_DIM)
        scores = jnp.einsum("slhd,tlhd->lhst", q, k)
        att = jax.nn.softmax(scores, axis=-1)
        ctx = jnp.einsum("lhst,tlhd->slhd", att, v).reshape(S0, SENT_LEN, D_MODEL)
        attn_out = ctx @ p["wo"] + p["bo"]
        h1 = _layer_norm(y + attn_out, p["g1"], p["b1n"])
        ff = jax.nn.relu(h1 @ p["w1"] + p["b1"]) @ p["w2"] + p["b2"]
        y = _layer_norm(h1 + ff, p["g2"], p["b2n"])
    y = _layer_norm(y, final_params["gamma"], final_params["beta"])
    out = jnp.einsum("sld,ol->sod", y, final_params["lin_w"])
    return out + final_params["lin_b"][None, :, None]


# ------------------------------ deterministic params -----------------------------------
def _init_layer(key):
    ks = jax.random.split(key, 12)
    s = 0.05
    n = lambda k, shape: s * jax.random.normal(k, shape, jnp.float32)
    return {
        "wqkv": n(ks[0], (D_MODEL, 3 * D_MODEL)),
        "bqkv": n(ks[1], (3 * D_MODEL,)),
        "wo": n(ks[2], (D_MODEL, D_MODEL)),
        "bo": n(ks[3], (D_MODEL,)),
        "g1": 1.0 + n(ks[4], (D_MODEL,)),
        "b1n": n(ks[5], (D_MODEL,)),
        "w1": n(ks[6], (D_MODEL, DIM_FF)),
        "b1": n(ks[7], (DIM_FF,)),
        "w2": n(ks[8], (DIM_FF, D_MODEL)),
        "b2": n(ks[9], (D_MODEL,)),
        "g2": 1.0 + n(ks[10], (D_MODEL,)),
        "b2n": n(ks[11], (D_MODEL,)),
    }


if __name__ == "__main__":
    import numpy as np

    key = jax.random.PRNGKey(0)
    kx, kp = jax.random.split(key)
    x = jax.random.normal(kx, (S0, SENT_LEN, D_MODEL), jnp.float32)

    keys = jax.random.split(kp, NUM_LAYERS + 1)
    layer_params = tuple(_init_layer(k) for k in keys[:NUM_LAYERS])
    fk = jax.random.split(keys[-1], 4)
    final_params = {
        "gamma": 1.0 + 0.05 * jax.random.normal(fk[0], (D_MODEL,), jnp.float32),
        "beta": 0.05 * jax.random.normal(fk[1], (D_MODEL,), jnp.float32),
        "lin_w": 0.1 * jax.random.normal(fk[2], (3, SENT_LEN), jnp.float32),
        "lin_b": 0.1 * jax.random.normal(fk[3], (3,), jnp.float32),
    }
    packed = pack_params(layer_params, final_params)

    out = jax.block_until_ready(forward(x, packed))
    assert out.shape == (S0, 3, D_MODEL)

    # Tolerance relaxed from 2e-3 to 2e-2: matmul operands are bf16 (f32 accumulation)
    # per the performance review; softmax/LayerNorm math remains f32.
    ref = reference_forward(x, layer_params, final_params)
    np.testing.assert_allclose(np.asarray(out), np.asarray(ref), rtol=2e-2, atol=2e-2)
    print("KERNEL_OK")
</pallas_src>

<mosaic_0001>
module attributes {stable_mosaic.version = 11 : i64} {
  func.func @fused_encoder_kernel(%arg0: memref<32x32xf32, #tpu.memory_space<vmem>>, %arg1: memref<448x128xbf16, #tpu.memory_space<vmem>>, %arg2: memref<80x128xf32, #tpu.memory_space<vmem>>, %arg3: memref<12x32xf32, #tpu.memory_space<vmem>>) attributes {dimension_semantics = [], scalar_prefetch = 0 : i64, scratch_operands = 0 : i64, tpu.core_type = #tpu.core_type<tc>} {
    %c0 = arith.constant 0 : index
    %c0_0 = arith.constant 0 : index
    %0 = vector.load %arg1[%c0, %c0_0] : memref<448x128xbf16, #tpu.memory_space<vmem>>, vector<128x128xbf16>
    %c0_1 = arith.constant 0 : index
    %c0_2 = arith.constant 0 : index
    %1 = vector.load %arg2[%c0_1, %c0_2] : memref<80x128xf32, #tpu.memory_space<vmem>>, vector<32x128xf32>
    %c0_3 = arith.constant 0 : index
    %c0_4 = arith.constant 0 : index
    %2 = vector.load %arg0[%c0_3, %c0_4] : memref<32x32xf32, #tpu.memory_space<vmem>>, vector<32x32xf32>
    %c128 = arith.constant 128 : index
    %c0_5 = arith.constant 0 : index
    %3 = vector.load %arg1[%c128, %c0_5] : memref<448x128xbf16, #tpu.memory_space<vmem>>, vector<32x128xbf16>
    %c160 = arith.constant 160 : index
    %c0_6 = arith.constant 0 : index
    %4 = vector.load %arg1[%c160, %c0_6] : memref<448x128xbf16, #tpu.memory_space<vmem>>, vector<32x128xbf16>
    %c192 = arith.constant 192 : index
    %c0_7 = arith.constant 0 : index
    %5 = vector.load %arg1[%c192, %c0_7] : memref<448x128xbf16, #tpu.memory_space<vmem>>, vector<32x128xbf16>
    %c224 = arith.constant 224 : index
    %c0_8 = arith.constant 0 : index
    %6 = vector.load %arg1[%c224, %c0_8] : memref<448x128xbf16, #tpu.memory_space<vmem>>, vector<64x128xbf16>
    %c32 = arith.constant 32 : index
    %c0_9 = arith.constant 0 : index
    %7 = vector.load %arg2[%c32, %c0_9] : memref<80x128xf32, #tpu.memory_space<vmem>>, vector<8x128xf32>
    %8 = vector.extract_strided_slice %7 {offsets = [0, 0], sizes = [1, 128], strides = [1, 1]} : vector<8x128xf32> to vector<1x128xf32>
    %9 = vector.extract_strided_slice %7 {offsets = [1, 0], sizes = [1, 32], strides = [1, 1]} : vector<8x128xf32> to vector<1x32xf32>
    %10 = vector.extract_strided_slice %7 {offsets = [2, 0], sizes = [1, 32], strides = [1, 1]} : vector<8x128xf32> to vector<1x32xf32>
    %11 = vector.extract_strided_slice %7 {offsets = [3, 0], sizes = [1, 32], strides = [1, 1]} : vector<8x128xf32> to vector<1x32xf32>
    %12 = vector.extract_strided_slice %7 {offsets = [4, 0], sizes = [1, 128], strides = [1, 1]} : vector<8x128xf32> to vector<1x128xf32>
    %13 = vector.extract_strided_slice %7 {offsets = [5, 0], sizes = [1, 32], strides = [1, 1]} : vector<8x128xf32> to vector<1x32xf32>
    %14 = vector.extract_strided_slice %7 {offsets = [6, 0], sizes = [1, 32], strides = [1, 1]} : vector<8x128xf32> to vector<1x32xf32>
    %15 = vector.extract_strided_slice %7 {offsets = [7, 0], sizes = [1, 32], strides = [1, 1]} : vector<8x128xf32> to vector<1x32xf32>
    %16 = arith.truncf %2 : vector<32x32xf32> to vector<32x32xbf16>
    %cst = arith.constant dense<0.000000e+00> : vector<32x128xf32>
    %17 = tpu.matmul %16, %3, %cst {dimension_numbers = #tpu.dot_dimension_numbers<[1], [0], [0], [1], [0, 0, 1, 1], [], []>} : vector<32x32xbf16>, vector<32x128xbf16>, vector<32x128xf32> -> vector<32x128xf32>
    %18 = vector.broadcast %8 : vector<1x128xf32> to vector<32x128xf32>
    %19 = arith.addf %17, %18 : vector<32x128xf32>
    %20 = vector.extract_strided_slice %19 {offsets = [0, 0], sizes = [32, 32], strides = [1, 1]} : vector<32x128xf32> to vector<32x32xf32>
    %21 = vector.extract_strided_slice %19 {offsets = [0, 32], sizes = [32, 32], strides = [1, 1]} : vector<32x128xf32> to vector<32x32xf32>
    %22 = vector.extract_strided_slice %19 {offsets = [0, 64], sizes = [32, 32], strides = [1, 1]} : vector<32x128xf32> to vector<32x32xf32>
    %23 = arith.truncf %22 : vector<32x32xf32> to vector<32x32xbf16>
    %24 = vector.extract_strided_slice %20 {offsets = [0, 0], sizes = [32, 8], strides = [1, 1]} : vector<32x32xf32> to vector<32x8xf32>
    %25 = vector.extract_strided_slice %21 {offsets = [0, 0], sizes = [32, 8], strides = [1, 1]} : vector<32x32xf32> to vector<32x8xf32>
    %cst_10 = arith.constant dense<0.000000e+00> : vector<32x32xf32>
    %26 = tpu.matmul %24, %25, %cst_10 {dimension_numbers = #tpu.dot_dimension_numbers<[1], [1], [0], [0], [0, 0, 1, 0], [], []>} : vector<32x8xf32>, vector<32x8xf32>, vector<32x32xf32> -> vector<32x32xf32>
    %27 = vector.extract_strided_slice %23 {offsets = [0, 0], sizes = [32, 8], strides = [1, 1]} : vector<32x32xbf16> to vector<32x8xbf16>
    %28 = vector.extract_strided_slice %4 {offsets = [0, 0], sizes = [8, 128], strides = [1, 1]} : vector<32x128xbf16> to vector<8x128xbf16>
    %cst_11 = arith.constant dense<0.000000e+00> : vector<32x128xf32>
    %29 = tpu.matmul %27, %28, %cst_11 {dimension_numbers = #tpu.dot_dimension_numbers<[1], [0], [0], [1], [0, 0, 1, 1], [], []>} : vector<32x8xbf16>, vector<8x128xbf16>, vector<32x128xf32> -> vector<32x128xf32>
    %30 = vector.extract_strided_slice %20 {offsets = [0, 8], sizes = [32, 8], strides = [1, 1]} : vector<32x32xf32> to vector<32x8xf32>
    %31 = vector.extract_strided_slice %21 {offsets = [0, 8], sizes = [32, 8], strides = [1, 1]} : vector<32x32xf32> to vector<32x8xf32>
    %cst_12 = arith.constant dense<0.000000e+00> : vector<32x32xf32>
    %32 = tpu.matmul %30, %31, %cst_12 {dimension_numbers = #tpu.dot_dimension_numbers<[1], [1], [0], [0], [0, 0, 1, 0], [], []>} : vector<32x8xf32>, vector<32x8xf32>, vector<32x32xf32> -> vector<32x32xf32>
    %33 = vector.extract_strided_slice %23 {offsets = [0, 8], sizes = [32, 8], strides = [1, 1]} : vector<32x32xbf16> to vector<32x8xbf16>
    %34 = vector.extract_strided_slice %4 {offsets = [8, 0], sizes = [8, 128], strides = [1, 1]} : vector<32x128xbf16> to vector<8x128xbf16>
    %cst_13 = arith.constant dense<0.000000e+00> : vector<32x128xf32>
    %35 = tpu.matmul %33, %34, %cst_13 {dimension_numbers = #tpu.dot_dimension_numbers<[1], [0], [0], [1], [0, 0, 1, 1], [], []>} : vector<32x8xbf16>, vector<8x128xbf16>, vector<32x128xf32> -> vector<32x128xf32>
    %36 = vector.extract_strided_slice %20 {offsets = [0, 16], sizes = [32, 8], strides = [1, 1]} : vector<32x32xf32> to vector<32x8xf32>
    %37 = vector.extract_strided_slice %21 {offsets = [0, 16], sizes = [32, 8], strides = [1, 1]} : vector<32x32xf32> to vector<32x8xf32>
    %cst_14 = arith.constant dense<0.000000e+00> : vector<32x32xf32>
    %38 = tpu.matmul %36, %37, %cst_14 {dimension_numbers = #tpu.dot_dimension_numbers<[1], [1], [0], [0], [0, 0, 1, 0], [], []>} : vector<32x8xf32>, vector<32x8xf32>, vector<32x32xf32> -> vector<32x32xf32>
    %39 = vector.extract_strided_slice %23 {offsets = [0, 16], sizes = [32, 8], strides = [1, 1]} : vector<32x32xbf16> to vector<32x8xbf16>
    %40 = vector.extract_strided_slice %4 {offsets = [16, 0], sizes = [8, 128], strides = [1, 1]} : vector<32x128xbf16> to vector<8x128xbf16>
    %cst_15 = arith.constant dense<0.000000e+00> : vector<32x128xf32>
    %41 = tpu.matmul %39, %40, %cst_15 {dimension_numbers = #tpu.dot_dimension_numbers<[1], [0], [0], [1], [0, 0, 1, 1], [], []>} : vector<32x8xbf16>, vector<8x128xbf16>, vector<32x128xf32> -> vector<32x128xf32>
    %42 = vector.extract_strided_slice %20 {offsets = [0, 24], sizes = [32, 8], strides = [1, 1]} : vector<32x32xf32> to vector<32x8xf32>
    %43 = vector.extract_strided_slice %21 {offsets = [0, 24], sizes = [32, 8], strides = [1, 1]} : vector<32x32xf32> to vector<32x8xf32>
    %cst_16 = arith.constant dense<0.000000e+00> : vector<32x32xf32>
    %44 = tpu.matmul %42, %43, %cst_16 {dimension_numbers = #tpu.dot_dimension_numbers<[1], [1], [0], [0], [0, 0, 1, 0], [], []>} : vector<32x8xf32>, vector<32x8xf32>, vector<32x32xf32> -> vector<32x32xf32>
    %45 = vector.extract_strided_slice %23 {offsets = [0, 24], sizes = [32, 8], strides = [1, 1]} : vector<32x32xbf16> to vector<32x8xbf16>
    %46 = vector.extract_strided_slice %4 {offsets = [24, 0], sizes = [8, 128], strides = [1, 1]} : vector<32x128xbf16> to vector<8x128xbf16>
    %cst_17 = arith.constant dense<0.000000e+00> : vector<32x128xf32>
    %47 = tpu.matmul %45, %46, %cst_17 {dimension_numbers = #tpu.dot_dimension_numbers<[1], [0], [0], [1], [0, 0, 1, 1], [], []>} : vector<32x8xbf16>, vector<8x128xbf16>, vector<32x128xf32> -> vector<32x128xf32>
    %48 = tpu.concatenate %26, %32, %38, %44 in 1 : vector<32x32xf32>, vector<32x32xf32>, vector<32x32xf32>, vector<32x32xf32> -> vector<32x128xf32>
    %49 = arith.addf %48, %1 : vector<32x128xf32>
    %cst_18 = arith.constant dense<0xFF800000> : vector<32xf32>
    %50 = vector.multi_reduction <maximumf>, %49, %cst_18 [1] : vector<32x128xf32> to vector<32xf32>
    %51 = vector.shape_cast %50 : vector<32xf32> to vector<32x1xf32>
    %52 = vector.broadcast %51 : vector<32x1xf32> to vector<32x128xf32>
    %53 = arith.subf %49, %52 : vector<32x128xf32>
    %54 = math.exp %53 : vector<32x128xf32>
    %55 = arith.truncf %54 : vector<32x128xf32> to vector<32x128xbf16>
    %cst_19 = arith.constant dense<0.000000e+00> : vector<32x128xf32>
    %56 = tpu.matmul %55, %0, %cst_19 {dimension_numbers = #tpu.dot_dimension_numbers<[1], [0], [0], [1], [0, 0, 1, 1], [], []>} : vector<32x128xbf16>, vector<128x128xbf16>, vector<32x128xf32> -> vector<32x128xf32>
    %57 = tpu.reciprocal %56 {approx = true} : vector<32x128xf32> -> vector<32x128xf32>
    %58 = arith.mulf %54, %57 : vector<32x128xf32>
    %59 = arith.truncf %58 : vector<32x128xf32> to vector<32x128xbf16>
    %60 = tpu.concatenate %29, %35, %41, %47 in 0 : vector<32x128xf32>, vector<32x128xf32>, vector<32x128xf32>, vector<32x128xf32> -> vector<128x128xf32>
    %61 = arith.truncf %60 : vector<128x128xf32> to vector<128x128xbf16>
    %cst_20 = arith.constant dense<0.000000e+00> : vector<32x128xf32>
    %62 = tpu.matmul %59, %61, %cst_20 {dimension_numbers = #tpu.dot_dimension_numbers<[1], [0], [0], [1], [0, 0, 1, 1], [], []>} : vector<32x128xbf16>, vector<128x128xbf16>, vector<32x128xf32> -> vector<32x128xf32>
    %63 = vector.extract_strided_slice %62 {offsets = [0, 0], sizes = [32, 32], strides = [1, 1]} : vector<32x128xf32> to vector<32x32xf32>
    %64 = vector.broadcast %9 : vector<1x32xf32> to vector<32x32xf32>
    %65 = arith.addf %63, %64 : vector<32x32xf32>
    %66 = arith.addf %2, %65 : vector<32x32xf32>
    %cst_21 = arith.constant dense<0.000000e+00> : vector<32xf32>
    %67 = vector.multi_reduction <add>, %66, %cst_21 [1] : vector<32x32xf32> to vector<32xf32>
    %68 = vector.shape_cast %67 : vector<32xf32> to vector<32x1xf32>
    %cst_22 = arith.constant 3.200000e+01 : f32
    %69 = vector.broadcast %cst_22 : f32 to vector<32x1xf32>
    %70 = arith.divf %68, %69 : vector<32x1xf32>
    %71 = vector.broadcast %70 : vector<32x1xf32> to vector<32x32xf32>
    %72 = arith.subf %66, %71 : vector<32x32xf32>
    %73 = arith.mulf %72, %72 : vector<32x32xf32>
    %cst_23 = arith.constant dense<0.000000e+00> : vector<32xf32>
    %74 = vector.multi_reduction <add>, %73, %cst_23 [1] : vector<32x32xf32> to vector<32xf32>
    %75 = vector.shape_cast %74 : vector<32xf32> to vector<32x1xf32>
    %cst_24 = arith.constant 3.200000e+01 : f32
    %76 = vector.broadcast %cst_24 : f32 to vector<32x1xf32>
    %77 = arith.divf %75, %76 : vector<32x1xf32>
    %78 = vector.broadcast %70 : vector<32x1xf32> to vector<32x32xf32>
    %79 = arith.subf %66, %78 : vector<32x32xf32>
    %cst_25 = arith.constant 9.99999974E-6 : f32
    %80 = vector.broadcast %cst_25 : f32 to vector<32x1xf32>
    %81 = arith.addf %77, %80 : vector<32x1xf32>
    %82 = math.rsqrt %81 : vector<32x1xf32>
    %83 = vector.broadcast %82 : vector<32x1xf32> to vector<32x32xf32>
    %84 = arith.mulf %79, %83 : vector<32x32xf32>
    %85 = vector.broadcast %10 : vector<1x32xf32> to vector<32x32xf32>
    %86 = arith.mulf %84, %85 : vector<32x32xf32>
    %87 = vector.broadcast %11 : vector<1x32xf32> to vector<32x32xf32>
    %88 = arith.addf %86, %87 : vector<32x32xf32>
    %89 = arith.truncf %88 : vector<32x32xf32> to vector<32x32xbf16>
    %cst_26 = arith.constant dense<0.000000e+00> : vector<32x128xf32>
    %90 = tpu.matmul %89, %5, %cst_26 {dimension_numbers = #tpu.dot_dimension_numbers<[1], [0], [0], [1], [0, 0, 1, 1], [], []>} : vector<32x32xbf16>, vector<32x128xbf16>, vector<32x128xf32> -> vector<32x128xf32>
    %91 = vector.broadcast %12 : vector<1x128xf32> to vector<32x128xf32>
    %92 = arith.addf %90, %91 : vector<32x128xf32>
    %cst_27 = arith.constant 0.000000e+00 : f32
    %93 = vector.broadcast %cst_27 : f32 to vector<32x128xf32>
    %94 = arith.maximumf %92, %93 : vector<32x128xf32>
    %95 = vector.extract_strided_slice %94 {offsets = [0, 0], sizes = [32, 64], strides = [1, 1]} : vector<32x128xf32> to vector<32x64xf32>
    %96 = arith.truncf %95 : vector<32x64xf32> to vector<32x64xbf16>
    %cst_28 = arith.constant dense<0.000000e+00> : vector<32x128xf32>
    %97 = tpu.matmul %96, %6, %cst_28 {dimension_numbers = #tpu.dot_dimension_numbers<[1], [0], [0], [1], [0, 0, 1, 1], [], []>} : vector<32x64xbf16>, vector<64x128xbf16>, vector<32x128xf32> -> vector<32x128xf32>
    %98 = vector.extract_strided_slice %97 {offsets = [0, 0], sizes = [32, 32], strides = [1, 1]} : vector<32x128xf32> to vector<32x32xf32>
    %99 = vector.broadcast %13 : vector<1x32xf32> to vector<32x32xf32>
    %100 = arith.addf %98, %99 : vector<32x32xf32>
    %101 = arith.addf %88, %100 : vector<32x32xf32>
    %cst_29 = arith.constant dense<0.000000e+00> : vector<32xf32>
    %102 = vector.multi_reduction <add>, %101, %cst_29 [1] : vector<32x32xf32> to vector<32xf32>
    %103 = vector.shape_cast %102 : vector<32xf32> to vector<32x1xf32>
    %cst_30 = arith.constant 3.200000e+01 : f32
    %104 = vector.broadcast %cst_30 : f32 to vector<32x1xf32>
    %105 = arith.divf %103, %104 : vector<32x1xf32>
    %106 = vector.broadcast %105 : vector<32x1xf32> to vector<32x32xf32>
    %107 = arith.subf %101, %106 : vector<32x32xf32>
    %108 = arith.mulf %107, %107 : vector<32x32xf32>
    %cst_31 = arith.constant dense<0.000000e+00> : vector<32xf32>
    %109 = vector.multi_reduction <add>, %108, %cst_31 [1] : vector<32x32xf32> to vector<32xf32>
    %110 = vector.shape_cast %109 : vector<32xf32> to vector<32x1xf32>
    %cst_32 = arith.constant 3.200000e+01 : f32
    %111 = vector.broadcast %cst_32 : f32 to vector<32x1xf32>
    %112 = arith.divf %110, %111 : vector<32x1xf32>
    %113 = vector.broadcast %105 : vector<32x1xf32> to vector<32x32xf32>
    %114 = arith.subf %101, %113 : vector<32x32xf32>
    %cst_33 = arith.constant 9.99999974E-6 : f32
    %115 = vector.broadcast %cst_33 : f32 to vector<32x1xf32>
    %116 = arith.addf %112, %115 : vector<32x1xf32>
    %117 = math.rsqrt %116 : vector<32x1xf32>
    %118 = vector.broadcast %117 : vector<32x1xf32> to vector<32x32xf32>
    %119 = arith.mulf %114, %118 : vector<32x32xf32>
    %120 = vector.broadcast %14 : vector<1x32xf32> to vector<32x32xf32>
    %121 = arith.mulf %119, %120 : vector<32x32xf32>
    %122 = vector.broadcast %15 : vector<1x32xf32> to vector<32x32xf32>
    %123 = arith.addf %121, %122 : vector<32x32xf32>
    %c288 = arith.constant 288 : index
    %c0_34 = arith.constant 0 : index
    %124 = vector.load %arg1[%c288, %c0_34] : memref<448x128xbf16, #tpu.memory_space<vmem>>, vector<32x128xbf16>
    %c320 = arith.constant 320 : index
    %c0_35 = arith.constant 0 : index
    %125 = vector.load %arg1[%c320, %c0_35] : memref<448x128xbf16, #tpu.memory_space<vmem>>, vector<32x128xbf16>
    %c352 = arith.constant 352 : index
    %c0_36 = arith.constant 0 : index
    %126 = vector.load %arg1[%c352, %c0_36] : memref<448x128xbf16, #tpu.memory_space<vmem>>, vector<32x128xbf16>
    %c384 = arith.constant 384 : index
    %c0_37 = arith.constant 0 : index
    %127 = vector.load %arg1[%c384, %c0_37] : memref<448x128xbf16, #tpu.memory_space<vmem>>, vector<64x128xbf16>
    %c40 = arith.constant 40 : index
    %c0_38 = arith.constant 0 : index
    %128 = vector.load %arg2[%c40, %c0_38] : memref<80x128xf32, #tpu.memory_space<vmem>>, vector<8x128xf32>
    %129 = vector.extract_strided_slice %128 {offsets = [0, 0], sizes = [1, 128], strides = [1, 1]} : vector<8x128xf32> to vector<1x128xf32>
    %130 = vector.extract_strided_slice %128 {offsets = [1, 0], sizes = [1, 32], strides = [1, 1]} : vector<8x128xf32> to vector<1x32xf32>
    %131 = vector.extract_strided_slice %128 {offsets = [2, 0], sizes = [1, 32], strides = [1, 1]} : vector<8x128xf32> to vector<1x32xf32>
    %132 = vector.extract_strided_slice %128 {offsets = [3, 0], sizes = [1, 32], strides = [1, 1]} : vector<8x128xf32> to vector<1x32xf32>
    %133 = vector.extract_strided_slice %128 {offsets = [4, 0], sizes = [1, 128], strides = [1, 1]} : vector<8x128xf32> to vector<1x128xf32>
    %134 = vector.extract_strided_slice %128 {offsets = [5, 0], sizes = [1, 32], strides = [1, 1]} : vector<8x128xf32> to vector<1x32xf32>
    %135 = vector.extract_strided_slice %128 {offsets = [6, 0], sizes = [1, 32], strides = [1, 1]} : vector<8x128xf32> to vector<1x32xf32>
    %136 = vector.extract_strided_slice %128 {offsets = [7, 0], sizes = [1, 32], strides = [1, 1]} : vector<8x128xf32> to vector<1x32xf32>
    %137 = arith.truncf %123 : vector<32x32xf32> to vector<32x32xbf16>
    %cst_39 = arith.constant dense<0.000000e+00> : vector<32x128xf32>
    %138 = tpu.matmul %137, %124, %cst_39 {dimension_numbers = #tpu.dot_dimension_numbers<[1], [0], [0], [1], [0, 0, 1, 1], [], []>} : vector<32x32xbf16>, vector<32x128xbf16>, vector<32x128xf32> -> vector<32x128xf32>
    %139 = vector.broadcast %129 : vector<1x128xf32> to vector<32x128xf32>
    %140 = arith.addf %138, %139 : vector<32x128xf32>
    %141 = vector.extract_strided_slice %140 {offsets = [0, 0], sizes = [32, 32], strides = [1, 1]} : vector<32x128xf32> to vector<32x32xf32>
    %142 = vector.extract_strided_slice %140 {offsets = [0, 32], sizes = [32, 32], strides = [1, 1]} : vector<32x128xf32> to vector<32x32xf32>
    %143 = vector.extract_strided_slice %140 {offsets = [0, 64], sizes = [32, 32], strides = [1, 1]} : vector<32x128xf32> to vector<32x32xf32>
    %144 = arith.truncf %143 : vector<32x32xf32> to vector<32x32xbf16>
    %145 = vector.extract_strided_slice %141 {offsets = [0, 0], sizes = [32, 8], strides = [1, 1]} : vector<32x32xf32> to vector<32x8xf32>
    %146 = vector.extract_strided_slice %142 {offsets = [0, 0], sizes = [32, 8], strides = [1, 1]} : vector<32x32xf32> to vector<32x8xf32>
    %cst_40 = arith.constant dense<0.000000e+00> : vector<32x32xf32>
    %147 = tpu.matmul %145, %146, %cst_40 {dimension_numbers = #tpu.dot_dimension_numbers<[1], [1], [0], [0], [0, 0, 1, 0], [], []>} : vector<32x8xf32>, vector<32x8xf32>, vector<32x32xf32> -> vector<32x32xf32>
    %148 = vector.extract_strided_slice %144 {offsets = [0, 0], sizes = [32, 8], strides = [1, 1]} : vector<32x32xbf16> to vector<32x8xbf16>
    %149 = vector.extract_strided_slice %125 {offsets = [0, 0], sizes = [8, 128], strides = [1, 1]} : vector<32x128xbf16> to vector<8x128xbf16>
    %cst_41 = arith.constant dense<0.000000e+00> : vector<32x128xf32>
    %150 = tpu.matmul %148, %149, %cst_41 {dimension_numbers = #tpu.dot_dimension_numbers<[1], [0], [0], [1], [0, 0, 1, 1], [], []>} : vector<32x8xbf16>, vector<8x128xbf16>, vector<32x128xf32> -> vector<32x128xf32>
    %151 = vector.extract_strided_slice %141 {offsets = [0, 8], sizes = [32, 8], strides = [1, 1]} : vector<32x32xf32> to vector<32x8xf32>
    %152 = vector.extract_strided_slice %142 {offsets = [0, 8], sizes = [32, 8], strides = [1, 1]} : vector<32x32xf32> to vector<32x8xf32>
    %cst_42 = arith.constant dense<0.000000e+00> : vector<32x32xf32>
    %153 = tpu.matmul %151, %152, %cst_42 {dimension_numbers = #tpu.dot_dimension_numbers<[1], [1], [0], [0], [0, 0, 1, 0], [], []>} : vector<32x8xf32>, vector<32x8xf32>, vector<32x32xf32> -> vector<32x32xf32>
    %154 = vector.extract_strided_slice %144 {offsets = [0, 8], sizes = [32, 8], strides = [1, 1]} : vector<32x32xbf16> to vector<32x8xbf16>
    %155 = vector.extract_strided_slice %125 {offsets = [8, 0], sizes = [8, 128], strides = [1, 1]} : vector<32x128xbf16> to vector<8x128xbf16>
    %cst_43 = arith.constant dense<0.000000e+00> : vector<32x128xf32>
    %156 = tpu.matmul %154, %155, %cst_43 {dimension_numbers = #tpu.dot_dimension_numbers<[1], [0], [0], [1], [0, 0, 1, 1], [], []>} : vector<32x8xbf16>, vector<8x128xbf16>, vector<32x128xf32> -> vector<32x128xf32>
    %157 = vector.extract_strided_slice %141 {offsets = [0, 16], sizes = [32, 8], strides = [1, 1]} : vector<32x32xf32> to vector<32x8xf32>
    %158 = vector.extract_strided_slice %142 {offsets = [0, 16], sizes = [32, 8], strides = [1, 1]} : vector<32x32xf32> to vector<32x8xf32>
    %cst_44 = arith.constant dense<0.000000e+00> : vector<32x32xf32>
    %159 = tpu.matmul %157, %158, %cst_44 {dimension_numbers = #tpu.dot_dimension_numbers<[1], [1], [0], [0], [0, 0, 1, 0], [], []>} : vector<32x8xf32>, vector<32x8xf32>, vector<32x32xf32> -> vector<32x32xf32>
    %160 = vector.extract_strided_slice %144 {offsets = [0, 16], sizes = [32, 8], strides = [1, 1]} : vector<32x32xbf16> to vector<32x8xbf16>
    %161 = vector.extract_strided_slice %125 {offsets = [16, 0], sizes = [8, 128], strides = [1, 1]} : vector<32x128xbf16> to vector<8x128xbf16>
    %cst_45 = arith.constant dense<0.000000e+00> : vector<32x128xf32>
    %162 = tpu.matmul %160, %161, %cst_45 {dimension_numbers = #tpu.dot_dimension_numbers<[1], [0], [0], [1], [0, 0, 1, 1], [], []>} : vector<32x8xbf16>, vector<8x128xbf16>, vector<32x128xf32> -> vector<32x128xf32>
    %163 = vector.extract_strided_slice %141 {offsets = [0, 24], sizes = [32, 8], strides = [1, 1]} : vector<32x32xf32> to vector<32x8xf32>
    %164 = vector.extract_strided_slice %142 {offsets = [0, 24], sizes = [32, 8], strides = [1, 1]} : vector<32x32xf32> to vector<32x8xf32>
    %cst_46 = arith.constant dense<0.000000e+00> : vector<32x32xf32>
    %165 = tpu.matmul %163, %164, %cst_46 {dimension_numbers = #tpu.dot_dimension_numbers<[1], [1], [0], [0], [0, 0, 1, 0], [], []>} : vector<32x8xf32>, vector<32x8xf32>, vector<32x32xf32> -> vector<32x32xf32>
    %166 = vector.extract_strided_slice %144 {offsets = [0, 24], sizes = [32, 8], strides = [1, 1]} : vector<32x32xbf16> to vector<32x8xbf16>
    %167 = vector.extract_strided_slice %125 {offsets = [24, 0], sizes = [8, 128], strides = [1, 1]} : vector<32x128xbf16> to vector<8x128xbf16>
    %cst_47 = arith.constant dense<0.000000e+00> : vector<32x128xf32>
    %168 = tpu.matmul %166, %167, %cst_47 {dimension_numbers = #tpu.dot_dimension_numbers<[1], [0], [0], [1], [0, 0, 1, 1], [], []>} : vector<32x8xbf16>, vector<8x128xbf16>, vector<32x128xf32> -> vector<32x128xf32>
    %169 = tpu.concatenate %147, %153, %159, %165 in 1 : vector<32x32xf32>, vector<32x32xf32>, vector<32x32xf32>, vector<32x32xf32> -> vector<32x128xf32>
    %170 = arith.addf %169, %1 : vector<32x128xf32>
    %cst_48 = arith.constant dense<0xFF800000> : vector<32xf32>
    %171 = vector.multi_reduction <maximumf>, %170, %cst_48 [1] : vector<32x128xf32> to vector<32xf32>
    %172 = vector.shape_cast %171 : vector<32xf32> to vector<32x1xf32>
    %173 = vector.broadcast %172 : vector<32x1xf32> to vector<32x128xf32>
    %174 = arith.subf %170, %173 : vector<32x128xf32>
    %175 = math.exp %174 : vector<32x128xf32>
    %176 = arith.truncf %175 : vector<32x128xf32> to vector<32x128xbf16>
    %cst_49 = arith.constant dense<0.000000e+00> : vector<32x128xf32>
    %177 = tpu.matmul %176, %0, %cst_49 {dimension_numbers = #tpu.dot_dimension_numbers<[1], [0], [0], [1], [0, 0, 1, 1], [], []>} : vector<32x128xbf16>, vector<128x128xbf16>, vector<32x128xf32> -> vector<32x128xf32>
    %178 = tpu.reciprocal %177 {approx = true} : vector<32x128xf32> -> vector<32x128xf32>
    %179 = arith.mulf %175, %178 : vector<32x128xf32>
    %180 = arith.truncf %179 : vector<32x128xf32> to vector<32x128xbf16>
    %181 = tpu.concatenate %150, %156, %162, %168 in 0 : vector<32x128xf32>, vector<32x128xf32>, vector<32x128xf32>, vector<32x128xf32> -> vector<128x128xf32>
    %182 = arith.truncf %181 : vector<128x128xf32> to vector<128x128xbf16>
    %cst_50 = arith.constant dense<0.000000e+00> : vector<32x128xf32>
    %183 = tpu.matmul %180, %182, %cst_50 {dimension_numbers = #tpu.dot_dimension_numbers<[1], [0], [0], [1], [0, 0, 1, 1], [], []>} : vector<32x128xbf16>, vector<128x128xbf16>, vector<32x128xf32> -> vector<32x128xf32>
    %184 = vector.extract_strided_slice %183 {offsets = [0, 0], sizes = [32, 32], strides = [1, 1]} : vector<32x128xf32> to vector<32x32xf32>
    %185 = vector.broadcast %130 : vector<1x32xf32> to vector<32x32xf32>
    %186 = arith.addf %184, %185 : vector<32x32xf32>
    %187 = arith.addf %123, %186 : vector<32x32xf32>
    %cst_51 = arith.constant dense<0.000000e+00> : vector<32xf32>
    %188 = vector.multi_reduction <add>, %187, %cst_51 [1] : vector<32x32xf32> to vector<32xf32>
    %189 = vector.shape_cast %188 : vector<32xf32> to vector<32x1xf32>
    %cst_52 = arith.constant 3.200000e+01 : f32
    %190 = vector.broadcast %cst_52 : f32 to vector<32x1xf32>
    %191 = arith.divf %189, %190 : vector<32x1xf32>
    %192 = vector.broadcast %191 : vector<32x1xf32> to vector<32x32xf32>
    %193 = arith.subf %187, %192 : vector<32x32xf32>
    %194 = arith.mulf %193, %193 : vector<32x32xf32>
    %cst_53 = arith.constant dense<0.000000e+00> : vector<32xf32>
    %195 = vector.multi_reduction <add>, %194, %cst_53 [1] : vector<32x32xf32> to vector<32xf32>
    %196 = vector.shape_cast %195 : vector<32xf32> to vector<32x1xf32>
    %cst_54 = arith.constant 3.200000e+01 : f32
    %197 = vector.broadcast %cst_54 : f32 to vector<32x1xf32>
    %198 = arith.divf %196, %197 : vector<32x1xf32>
    %199 = vector.broadcast %191 : vector<32x1xf32> to vector<32x32xf32>
    %200 = arith.subf %187, %199 : vector<32x32xf32>
    %cst_55 = arith.constant 9.99999974E-6 : f32
    %201 = vector.broadcast %cst_55 : f32 to vector<32x1xf32>
    %202 = arith.addf %198, %201 : vector<32x1xf32>
    %203 = math.rsqrt %202 : vector<32x1xf32>
    %204 = vector.broadcast %203 : vector<32x1xf32> to vector<32x32xf32>
    %205 = arith.mulf %200, %204 : vector<32x32xf32>
    %206 = vector.broadcast %131 : vector<1x32xf32> to vector<32x32xf32>
    %207 = arith.mulf %205, %206 : vector<32x32xf32>
    %208 = vector.broadcast %132 : vector<1x32xf32> to vector<32x32xf32>
    %209 = arith.addf %207, %208 : vector<32x32xf32>
    %210 = arith.truncf %209 : vector<32x32xf32> to vector<32x32xbf16>
    %cst_56 = arith.constant dense<0.000000e+00> : vector<32x128xf32>
    %211 = tpu.matmul %210, %126, %cst_56 {dimension_numbers = #tpu.dot_dimension_numbers<[1], [0], [0], [1], [0, 0, 1, 1], [], []>} : vector<32x32xbf16>, vector<32x128xbf16>, vector<32x128xf32> -> vector<32x128xf32>
    %212 = vector.broadcast %133 : vector<1x128xf32> to vector<32x128xf32>
    %213 = arith.addf %211, %212 : vector<32x128xf32>
    %cst_57 = arith.constant 0.000000e+00 : f32
    %214 = vector.broadcast %cst_57 : f32 to vector<32x128xf32>
    %215 = arith.maximumf %213, %214 : vector<32x128xf32>
    %216 = vector.extract_strided_slice %215 {offsets = [0, 0], sizes = [32, 64], strides = [1, 1]} : vector<32x128xf32> to vector<32x64xf32>
    %217 = arith.truncf %216 : vector<32x64xf32> to vector<32x64xbf16>
    %cst_58 = arith.constant dense<0.000000e+00> : vector<32x128xf32>
    %218 = tpu.matmul %217, %127, %cst_58 {dimension_numbers = #tpu.dot_dimension_numbers<[1], [0], [0], [1], [0, 0, 1, 1], [], []>} : vector<32x64xbf16>, vector<64x128xbf16>, vector<32x128xf32> -> vector<32x128xf32>
    %219 = vector.extract_strided_slice %218 {offsets = [0, 0], sizes = [32, 32], strides = [1, 1]} : vector<32x128xf32> to vector<32x32xf32>
    %220 = vector.broadcast %134 : vector<1x32xf32> to vector<32x32xf32>
    %221 = arith.addf %219, %220 : vector<32x32xf32>
    %222 = arith.addf %209, %221 : vector<32x32xf32>
    %cst_59 = arith.constant dense<0.000000e+00> : vector<32xf32>
    %223 = vector.multi_reduction <add>, %222, %cst_59 [1] : vector<32x32xf32> to vector<32xf32>
    %224 = vector.shape_cast %223 : vector<32xf32> to vector<32x1xf32>
    %cst_60 = arith.constant 3.200000e+01 : f32
    %225 = vector.broadcast %cst_60 : f32 to vector<32x1xf32>
    %226 = arith.divf %224, %225 : vector<32x1xf32>
    %227 = vector.broadcast %226 : vector<32x1xf32> to vector<32x32xf32>
    %228 = arith.subf %222, %227 : vector<32x32xf32>
    %229 = arith.mulf %228, %228 : vector<32x32xf32>
    %cst_61 = arith.constant dense<0.000000e+00> : vector<32xf32>
    %230 = vector.multi_reduction <add>, %229, %cst_61 [1] : vector<32x32xf32> to vector<32xf32>
    %231 = vector.shape_cast %230 : vector<32xf32> to vector<32x1xf32>
    %cst_62 = arith.constant 3.200000e+01 : f32
    %232 = vector.broadcast %cst_62 : f32 to vector<32x1xf32>
    %233 = arith.divf %231, %232 : vector<32x1xf32>
    %234 = vector.broadcast %226 : vector<32x1xf32> to vector<32x32xf32>
    %235 = arith.subf %222, %234 : vector<32x32xf32>
    %cst_63 = arith.constant 9.99999974E-6 : f32
    %236 = vector.broadcast %cst_63 : f32 to vector<32x1xf32>
    %237 = arith.addf %233, %236 : vector<32x1xf32>
    %238 = math.rsqrt %237 : vector<32x1xf32>
    %239 = vector.broadcast %238 : vector<32x1xf32> to vector<32x32xf32>
    %240 = arith.mulf %235, %239 : vector<32x32xf32>
    %241 = vector.broadcast %135 : vector<1x32xf32> to vector<32x32xf32>
    %242 = arith.mulf %240, %241 : vector<32x32xf32>
    %243 = vector.broadcast %136 : vector<1x32xf32> to vector<32x32xf32>
    %244 = arith.addf %242, %243 : vector<32x32xf32>
    %c48 = arith.constant 48 : index
    %c0_64 = arith.constant 0 : index
    %245 = vector.load %arg2[%c48, %c0_64] : memref<80x128xf32, #tpu.memory_space<vmem>>, vector<2x128xf32>
    %c50 = arith.constant 50 : index
    %c0_65 = arith.constant 0 : index
    %246 = vector.load %arg2[%c50, %c0_65] : memref<80x128xf32, #tpu.memory_space<vmem>>, vector<12x128xf32>
    %247 = vector.extract_strided_slice %246 {offsets = [0, 0], sizes = [12, 32], strides = [1, 1]} : vector<12x128xf32> to vector<12x32xf32>
    %c62 = arith.constant 62 : index
    %c0_66 = arith.constant 0 : index
    %248 = vector.load %arg2[%c62, %c0_66] : memref<80x128xf32, #tpu.memory_space<vmem>>, vector<12x128xf32>
    %249 = vector.extract_strided_slice %248 {offsets = [0, 0], sizes = [12, 32], strides = [1, 1]} : vector<12x128xf32> to vector<12x32xf32>
    %250 = vector.extract_strided_slice %245 {offsets = [0, 0], sizes = [1, 32], strides = [1, 1]} : vector<2x128xf32> to vector<1x32xf32>
    %251 = vector.extract_strided_slice %245 {offsets = [1, 0], sizes = [1, 32], strides = [1, 1]} : vector<2x128xf32> to vector<1x32xf32>
    %cst_67 = arith.constant dense<0.000000e+00> : vector<32xf32>
    %252 = vector.multi_reduction <add>, %244, %cst_67 [1] : vector<32x32xf32> to vector<32xf32>
    %253 = vector.shape_cast %252 : vector<32xf32> to vector<32x1xf32>
    %cst_68 = arith.constant 3.200000e+01 : f32
    %254 = vector.broadcast %cst_68 : f32 to vector<32x1xf32>
    %255 = arith.divf %253, %254 : vector<32x1xf32>
    %256 = vector.broadcast %255 : vector<32x1xf32> to vector<32x32xf32>
    %257 = arith.subf %244, %256 : vector<32x32xf32>
    %258 = arith.mulf %257, %257 : vector<32x32xf32>
    %cst_69 = arith.constant dense<0.000000e+00> : vector<32xf32>
    %259 = vector.multi_reduction <add>, %258, %cst_69 [1] : vector<32x32xf32> to vector<32xf32>
    %260 = vector.shape_cast %259 : vector<32xf32> to vector<32x1xf32>
    %cst_70 = arith.constant 3.200000e+01 : f32
    %261 = vector.broadcast %cst_70 : f32 to vector<32x1xf32>
    %262 = arith.divf %260, %261 : vector<32x1xf32>
    %263 = vector.broadcast %255 : vector<32x1xf32> to vector<32x32xf32>
    %264 = arith.subf %244, %263 : vector<32x32xf32>
    %cst_71 = arith.constant 9.99999974E-6 : f32
    %265 = vector.broadcast %cst_71 : f32 to vector<32x1xf32>
    %266 = arith.addf %262, %265 : vector<32x1xf32>
    %267 = math.rsqrt %266 : vector<32x1xf32>
    %268 = vector.broadcast %267 : vector<32x1xf32> to vector<32x32xf32>
    %269 = arith.mulf %264, %268 : vector<32x32xf32>
    %270 = vector.broadcast %250 : vector<1x32xf32> to vector<32x32xf32>
    %271 = arith.mulf %269, %270 : vector<32x32xf32>
    %272 = vector.broadcast %251 : vector<1x32xf32> to vector<32x32xf32>
    %273 = arith.addf %271, %272 : vector<32x32xf32>
    %cst_72 = arith.constant dense<0.000000e+00> : vector<12x32xf32>
    %274 = tpu.matmul %249, %273, %cst_72 {dimension_numbers = #tpu.dot_dimension_numbers<[1], [0], [0], [1], [0, 0, 1, 1], [], []>} : vector<12x32xf32>, vector<32x32xf32>, vector<12x32xf32> -> vector<12x32xf32>
    %275 = arith.addf %274, %247 : vector<12x32xf32>
    %c0_73 = arith.constant 0 : index
    %c0_74 = arith.constant 0 : index
    %276 = vector.load %arg3[%c0_73, %c0_74] : memref<12x32xf32, #tpu.memory_space<vmem>>, vector<12x32xf32>
    tpu.vector_store %arg3[%c0_73, %c0_74], %275 {strides = array<i32>} : memref<12x32xf32, #tpu.memory_space<vmem>>, vector<12x32xf32>,
    return
  }
}

</mosaic_0001>

<bundles_post_ra>
// kernel: forward.1
= control target key start
LH: loop header
LB: loop body
LE: loop exit
PB: predicated region body
PF: predicated region fallthrough
CT: control target
= control target key end

     0   :  { %8 = vsyncpa [#allocation3], 0  ;;  %s4497_s0 = inlined_call_operand.hbm [shape: f32[32,32], index: 0, kind: input, shape index: {}]   ;;  %s4498_s1 = inlined_call_operand.hbm [shape: bf16[448,128], index: 1, kind: input, shape index: {}]   ;;  %s4499_s2 = inlined_call_operand.hbm [shape: f32[80,128], index: 2, kind: input, shape index: {}]   ;;  %s4500_s3 = inlined_call_operand.vmem [shape: f32[12,32], index: 3, kind: output, shape index: {}]  }
   0x1   :  { %9 = vsyncpa [#allocation5], 0  ;;  %s3933_s12 = smov [#allocation4]   ;;  %s3863_s16 = scalar_lea.hbm %s4498_s1, 3584 }
   0x2   :  { %s27_s13 = sshll.u32 %s3933_s12, 4  ;;  %p3864_p0 = scmp.ne.s32.totalorder %s4498_s1, %s3863_s16  ;;  %s28_s13 = int_to_ptr.vmem [resolvable:$true] %s27_s13 }
   0x3   :  { %p3867_p1 = scmp.lt.u32.totalorder %s3863_s16, %s4498_s1 }
   0x5   :  { %p3869_p2 = pnand %p3867_p1, %p3864_p0 }
   0x7   :  { %3872 = shalt.err (!%p3869_p2)
}
   0x8   :  { %s3873_s21 = scalar_lea.vmem %s28_s13, 3584  ;;  %p3878_p4 = scmp.lt.s32.totalorder %s28_s13, %s28_s13 }
   0x9   :  { %p3874_p3 = scmp.ne.s32.totalorder %s28_s13, %s3873_s21  ;;  %p3879_p5 = scmp.lt.s32.totalorder %s3873_s21, %s3873_s21 }
   0xb   :  { %p3880_p6 = por %p3879_p5, %p3878_p4 }
   0xd   :  { %p3881_p7 = pnand %p3880_p6, %p3874_p3 }
   0xf   :  { %3884 = shalt.err (!%p3881_p7)
}
  0x10   :  { %s3934_s22 = smov 64   ;;  %s3935_s23 = smov 4  }
  0x11   :  { %33 = dma.hbm_to_vmem [thread:$0]  %s4498_s1, 3584, %s28_s13, [#allocation5], %s3934_s22, %s3934_s22, %s3935_s23  }
  0x12   :  { %s3936_s26 = smov [#allocation2]   ;;  %s3885_s30 = scalar_lea.hbm %s4497_s0, 512 }
  0x13   :  { %s15_s27 = sshll.u32 %s3936_s26, 4  ;;  %p3886_p8 = scmp.ne.s32.totalorder %s4497_s0, %s3885_s30  ;;  %s16_s27 = int_to_ptr.vmem [resolvable:$true] %s15_s27 }
  0x14   :  { %p3889_p9 = scmp.lt.u32.totalorder %s3885_s30, %s4497_s0 }
  0x16   :  { %p3891_p10 = pnand %p3889_p9, %p3886_p8 }
  0x18   :  { %3894 = shalt.err (!%p3891_p10)
}
  0x19   :  { %s3895_s8 = scalar_lea.vmem %s16_s27, 512  ;;  %p3900_p12 = scmp.lt.s32.totalorder %s16_s27, %s16_s27 }
  0x1a   :  { %p3896_p11 = scmp.ne.s32.totalorder %s16_s27, %s3895_s8  ;;  %p3901_p13 = scmp.lt.s32.totalorder %s3895_s8, %s3895_s8 }
  0x1c   :  { %p3902_p0 = por %p3901_p13, %p3900_p12 }
  0x1e   :  { %p3903_p1 = pnand %p3902_p0, %p3896_p11 }
  0x20   :  { %3906 = shalt.err (!%p3903_p1)
}
  0x21   :  { %s3937_s1 = smov 128   ;;  %s3938_s9 = smov 8  }
  0x22   :  { %21 = dma.hbm_to_vmem [thread:$0]  %s4497_s0, 512, %s16_s27, [#allocation3], %s3937_s1, %s3937_s1, %s3938_s9  }
  0x23   :  { %s3939_s12 = smov [#allocation6]   ;;  %s3907_s16 = scalar_lea.hbm %s4499_s2, 1280 }
  0x24   :  { %s39_s13 = sshll.u32 %s3939_s12, 4  ;;  %p3908_p2 = scmp.ne.s32.totalorder %s4499_s2, %s3907_s16  ;;  %s40_s13 = int_to_ptr.vmem [resolvable:$true] %s39_s13 }
  0x25   :  { %p3911_p3 = scmp.lt.u32.totalorder %s3907_s16, %s4499_s2 }
  0x27   :  { %p3913_p4 = pnand %p3911_p3, %p3908_p2 }
  0x29   :  { %3916 = shalt.err (!%p3913_p4)
}
  0x2a   :  { %s3917_s21 = scalar_lea.vmem %s40_s13, 1280  ;;  %p3922_p6 = scmp.lt.s32.totalorder %s40_s13, %s40_s13 }
  0x2b   :  { %p3918_p5 = scmp.ne.s32.totalorder %s40_s13, %s3917_s21  ;;  %p3923_p7 = scmp.lt.s32.totalorder %s3917_s21, %s3917_s21 }
  0x2d   :  { %p3924_p8 = por %p3923_p7, %p3922_p6 }
  0x2f   :  { %p3925_p9 = pnand %p3924_p8, %p3918_p5 }
  0x31   :  { %3928 = shalt.err (!%p3925_p9)
}
  0x32   :  { %45 = dma.hbm_to_vmem [thread:$0]  %s4499_s2, 1280, %s40_s13, [#allocation5], %s3937_s1, %s3937_s1, %s3938_s9  }
  0x33   :  { %3929 = dma.done.wait [#allocation3], 512  }
  0x34   :  { %3930 = vsyncadd [#allocation3], 4294966784 }
  0x35   :  { %3931 = dma.done.wait [#allocation5], 4864  }
  0x36   :  { %3932 = vsyncadd [#allocation5], 4294962432  ;;  %v3754_v0 = vld [vmem:[#allocation4 + $0x40] sm:$0xff]   ;;  %v3755_v1 = vld [vmem:[#allocation4 + $0x48] sm:$0xff]   ;;  %vm119_vm0 = vcmask 261120   ;;  %vm303_vm1 = vcmask 1043456   ;;  %v103_v9 = vlaneseq }
  0x37   :  { %3237 = vmatprep.subr.bf16.mxu1 %v3754_v0  ;;  %v4009_v2 = vld [vmem:[#allocation2] sm:$0xff]  ;;  %v4011_v3 = vld [vmem:[#allocation2 + $0x8] sm:$0xff]  ;;  %v4015_v5 = vld [vmem:[#allocation2 + $0x10] sm:$0xff]  ;;  %vm189_vm2 = vcmask 64512   ;;  %s3940_s2 = smov 96   ;;  %s3941_s24 = smov 88  }
  0x38   :  { %3238 = vmatpush3.bf16.msra.mxu1 %v3754_v0  ;;  %v101_v4 = vpack.c.bf16 %v4011_v3, %v4009_v2  ;;  %v4017_v6 = vld [vmem:[#allocation2 + $0x18] sm:$0xff]  ;;  %v84_v8 = vld [vmem:[#allocation4 + $0x50] sm:$0xf]  ;;  %v4024_v10 = vshrl.u32 %v103_v9, 7  ;;  %v4029_v12 = vld [vmem:[#allocation6 + $0x20] sm:$0xff]  ;;  %s3942_s25 = smov 120  }
  0x39   :  { %3239 = vmatprep.subr.bf16.mxu1 %v3755_v1  ;;  %v102_v7 = vpack.c.bf16 %v4017_v6, %v4015_v5  ;;  %3648 = vmatprep.subr.msk.bf16.mxu0 %vm303_vm1, %v84_v8  ;;  %v305_v13 = vsel %vm303_vm1, %v84_v8, 0  ;;  %s3943_s26 = smov 80   ;;  %s3944_s27 = smov 72   ;;  %vm4095_vm3 = vmpackc.low %vm189_vm2, %vm189_vm2  ;;  %v85_v48 = vld [vmem:[#allocation4 + $0x54] sm:$0xf]  ;;  %vm945_vm4 = vcmask 523264  }
  0x3a   :  { %3241 = vmatprep.mubr.msk.bf16.mxu1 %vm119_vm0, %v101_v4  ;;  %v4027_v11 = vsub.s32 0, %v4024_v10  ;;  %3260 = vmatpush3.bf16.msra.mxu0 %v305_v13  ;;  %s3945_s28 = smov 56   ;;  %s3946_s29 = smov 48   ;;  %v86_v51 = vld [vmem:[#allocation4 + $0x58] sm:$0xf]  ;;  %v484_v52 = vsel %vm303_vm1, %v85_v48, 0 }
  0x3b   :  { %s3947_s30 = smov 112   ;;  %s3948_s4 = smov 104   ;;  %v663_v62 = vsel %vm303_vm1, %v86_v51, 0  ;;  %vm950_vm5 = vcmask 785408   ;;  %vm2949_vm6 = vcmask 257024  }
  0x3c   :  { %3240 = vmatpush3.bf16.msra.mxu1 %v3755_v1  ;;  %v106_v14 = vrot.slane %v4029_v12, %v4027_v11  ;;  %s3949_s5 = smov 32   ;;  %s3950_s6 = smov 40  }
  0x3f   :  { %3242 = vmatmul.mubr.msk.bf16.vlgmr.msra.gmra.mrb[0].mxu1 %vm119_vm0, %v102_v7 }
 0x112   :  { %v3243_v15 = vpop.f32.mrb[0].mxu1 }
 0x113   :  { %v160_v16 = vpop.f32.mrb[1].mxu1  ;;  %v4043_v24 = vadd.f32 %v3243_v15, %v106_v14 }
 0x114   :  { %v161_v17 = vadd.f32 %v160_v16, %v106_v14  ;;  %v3244_v18 = vpop.f32.mrb[2].mxu1 }
 0x115   :  { %v163_v19 = vpop.f32.mrb[3].mxu1  ;;  %v4037_v21 = vadd.f32 %v3244_v18, %v106_v14 }
 0x116   :  { %v4034_v20 = vadd.f32 %v163_v19, %v106_v14  ;;  %3253 = vmatprep.mubr.msk.f32.mxu1 %vm189_vm2, %v161_v17 }
 0x117   :  { %v4050_v25 = vpack.c.bf16 %v4037_v21, %v4043_v24  ;;  %v3684_v26 = vpack.i.bf16 %v4037_v21, %v4043_v24 }
 0x118   :  { %v3674_v22 = vpack.i.bf16 %v4034_v20, %v161_v17  ;;  %v4041_v23 = vpack.c.bf16 %v4034_v20, %v161_v17 }
 0x11a   :  { %3675 = vrot.lane.b32.xlu0 %v3674_v22, %s3940_s2  ;;  %293 = vrot.lane.b32.xlu1 %v4041_v23, %s3934_s22 }
 0x11e   :  { %3680 = vrot.lane.b32.xlu0 %v3674_v22, %s3941_s24  ;;  %295 = vrot.lane.b32.xlu1 %v4050_v25, %s3934_s22 }
 0x122   :  { %3685 = vrot.lane.b32.xlu0 %v3684_v26, %s3940_s2  ;;  %3690 = vrot.lane.b32.xlu1 %v3684_v26, %s3941_s24 }
 0x126   :  { %356 = vrot.lane.b32.xlu0 %v161_v17, %s3942_s25  ;;  %358 = vrot.lane.b32.xlu1 %v4034_v20, %s3942_s25 }
 0x12a   :  { %360 = vrot.lane.b32.xlu0 %v4043_v24, %s3942_s25  ;;  %362 = vrot.lane.b32.xlu1 %v4037_v21, %s3942_s25 }
 0x12e   :  { %3695 = vrot.lane.b32.xlu0 %v3674_v22, %s3943_s26  ;;  %3700 = vrot.lane.b32.xlu1 %v3674_v22, %s3944_s27 }
 0x132   :  { %473 = vrot.lane.b32.xlu0 %v4041_v23, %s3945_s28  ;;  %475 = vrot.lane.b32.xlu1 %v4050_v25, %s3945_s28 }
 0x136   :  { %652 = vrot.lane.b32.xlu0 %v4041_v23, %s3946_s29  ;;  %654 = vrot.lane.b32.xlu1 %v4050_v25, %s3946_s29 }
 0x13a   :  { %3705 = vrot.lane.b32.xlu0 %v3684_v26, %s3943_s26  ;;  %3710 = vrot.lane.b32.xlu1 %v3684_v26, %s3944_s27 }
 0x13e   :  { %535 = vrot.lane.b32.xlu0 %v161_v17, %s3947_s30  ;;  %537 = vrot.lane.b32.xlu1 %v4034_v20, %s3947_s30 }
 0x142   :  { %714 = vrot.lane.b32.xlu0 %v161_v17, %s3948_s4  ;;  %716 = vrot.lane.b32.xlu1 %v4034_v20, %s3948_s4 }
 0x146   :  { %539 = vrot.lane.b32.xlu0 %v4043_v24, %s3947_s30  ;;  %541 = vrot.lane.b32.xlu1 %v4037_v21, %s3947_s30 }
 0x14a   :  { %718 = vrot.lane.b32.xlu0 %v4043_v24, %s3948_s4  ;;  %720 = vrot.lane.b32.xlu1 %v4037_v21, %s3948_s4 }
 0x18c   :  { %v3676_v27 = vpop.permute.xlu0 %3675  ;;  %v294_v28 = vpop.permute.xlu1 %293 }
 0x18d   :  { %v3678_v29 = vunpack.i.h.bf16 %v3676_v27  ;;  %v3677_v30 = vunpack.i.l.bf16 %v3676_v27  ;;  %3261 = vmatprep.mubr.msk.bf16.mxu0 %vm189_vm2, %v294_v28 }
 0x18f   :  { %v3544_v32 = vpack.c.bf16 %v3678_v29, %v3677_v30 }
 0x190   :  { %v3681_v33 = vpop.permute.xlu0 %3680  ;;  %v296_v34 = vpop.permute.xlu1 %295 }
 0x191   :  { %v3683_v35 = vunpack.i.h.bf16 %v3681_v33  ;;  %v3682_v36 = vunpack.i.l.bf16 %v3681_v33  ;;  %3546 = vmatprep.subr.msk.bf16.mxu1 %vm4095_vm3, %v3544_v32  ;;  %3262 = vmatmul.mubr.msk.bf16.vlgmr.msra.gmra.mrb[0].mxu0 %vm189_vm2, %v296_v34 }
 0x192   :  { %3549 = vmatpush3.bf16.xpose.msk.msra.mxu1 %vm4095_vm3, %v3544_v32 }
 0x193   :  { %v3556_v37 = vpack.c.bf16 %v3683_v35, %v3682_v36 }
 0x194   :  { %v3686_v38 = vpop.permute.xlu0 %3685  ;;  %v3691_v39 = vpop.permute.xlu1 %3690 }
 0x195   :  { %v3688_v40 = vunpack.i.h.bf16 %v3686_v38  ;;  %v3687_v41 = vunpack.i.l.bf16 %v3686_v38  ;;  %v3693_v42 = vunpack.i.h.bf16 %v3691_v39  ;;  %v3692_v43 = vunpack.i.l.bf16 %v3691_v39  ;;  %3558 = vmatprep.subr.msk.bf16.mxu0 %vm4095_vm3, %v3556_v37 }
 0x196   :  { %3561 = vmatpush3.bf16.xpose.msk.msra.mxu0 %vm4095_vm3, %v3556_v37 }
 0x197   :  { %v3550_v44 = vpack.c.bf16 %v3688_v40, %v3687_v41  ;;  %v3562_v45 = vpack.c.bf16 %v3693_v42, %v3692_v43 }
 0x198   :  { %v357_v46 = vpop.permute.xlu0 %356  ;;  %v359_v47 = vpop.permute.xlu1 %358 }
 0x199   :  { %3552 = vmatprep.subr.msk.bf16.mxu1 %vm4095_vm3, %v3550_v44  ;;  %3564 = vmatprep.subr.msk.bf16.mxu0 %vm4095_vm3, %v3562_v45 }
 0x19a   :  { %3273 = vmatprep.mubr.msk.f32.mxu0 %vm189_vm2, %v357_v46  ;;  %3555 = vmatpush3.bf16.xpose.msk.msra.mxu1 %vm4095_vm3, %v3550_v44 }
 0x19b   :  { %3649 = vmatprep.subr.msk.bf16.mxu1 %vm303_vm1, %v85_v48 }
 0x19c   :  { %v361_v49 = vpop.permute.xlu0 %360  ;;  %v363_v50 = vpop.permute.xlu1 %362 }
 0x19e   :  { %3567 = vmatpush3.bf16.xpose.msk.msra.mxu0 %vm4095_vm3, %v3562_v45 }
 0x19f   :  { %3650 = vmatprep.subr.msk.bf16.mxu0 %vm303_vm1, %v86_v51 }
 0x1a0   :  { %v3696_v53 = vpop.permute.xlu0 %3695  ;;  %v3701_v54 = vpop.permute.xlu1 %3700 }
 0x1a1   :  { %v3698_v55 = vunpack.i.h.bf16 %v3696_v53  ;;  %v3697_v56 = vunpack.i.l.bf16 %v3696_v53  ;;  %3254 = vmatmul.mubr.msk.f32.vlgmr.msra.gmra.mrb[4].mxu1 %vm189_vm2, %v4034_v20  ;;  %v3703_v57 = vunpack.i.h.bf16 %v3701_v54  ;;  %v3702_v58 = vunpack.i.l.bf16 %v3701_v54 }
 0x1a2   :  { %3256 = vmatprep.mubr.msk.f32.mxu1 %vm189_vm2, %v4043_v24  ;;  %3280 = vmatpush3.bf16.msra.mxu1 %v484_v52 }
 0x1a3   :  { %v3568_v59 = vpack.c.bf16 %v3698_v55, %v3697_v56  ;;  %v3580_v63 = vpack.c.bf16 %v3703_v57, %v3702_v58 }
 0x1a4   :  { %v474_v60 = vpop.permute.xlu0 %473  ;;  %v476_v61 = vpop.permute.xlu1 %475 }
 0x1a5   :  { %3257 = vmatmul.mubr.msk.f32.gmra.mrb[6].mxu1 %vm189_vm2, %v4037_v21  ;;  %3274 = vmatmul.mubr.msk.f32.vlgmr.msra.gmra.mrb[4].mxu0 %vm189_vm2, %v359_v47 }
 0x1a6   :  { %3570 = vmatprep.subr.msk.bf16.mxu1 %vm4095_vm3, %v3568_v59  ;;  %3276 = vmatprep.mubr.msk.f32.mxu0 %vm189_vm2, %v361_v49 }
 0x1a7   :  { %3281 = vmatprep.mubr.msk.bf16.mxu1 %vm189_vm2, %v474_v60  ;;  %3300 = vmatpush3.bf16.msra.mxu0 %v663_v62  ;;  %v87_v62 = vld [vmem:[#allocation4 + $0x5c] sm:$0xf] }
 0x1a8   :  { %3582 = vmatprep.subr.msk.bf16.mxu0 %vm4095_vm3, %v3580_v63  ;;  %v653_v0 = vpop.permute.xlu0 %652  ;;  %v655_v1 = vpop.permute.xlu1 %654 }
 0x1a9   :  { %3277 = vmatmul.mubr.msk.f32.gmra.mrb[6].mxu0 %vm189_vm2, %v363_v50  ;;  %3282 = vmatmul.mubr.msk.bf16.vlgmr.msra.gmra.mrb[8].mxu1 %vm189_vm2, %v476_v61 }
 0x1aa   :  { %3301 = vmatprep.mubr.msk.bf16.mxu0 %vm189_vm2, %v653_v0 }
 0x1ab   :  { %3573 = vmatpush3.bf16.xpose.msk.msra.mxu1 %vm4095_vm3, %v3568_v59 }
 0x1ac   :  { %v3706_v4 = vpop.permute.xlu0 %3705  ;;  %v3711_v7 = vpop.permute.xlu1 %3710 }
 0x1ad   :  { %v3708_v8 = vunpack.i.h.bf16 %v3706_v4  ;;  %v3707_v9 = vunpack.i.l.bf16 %v3706_v4  ;;  %v3713_v13 = vunpack.i.h.bf16 %v3711_v7  ;;  %v3712_v14 = vunpack.i.l.bf16 %v3711_v7  ;;  %3302 = vmatmul.mubr.msk.bf16.vlgmr.msra.gmra.mrb[8].mxu0 %vm189_vm2, %v655_v1 }
 0x1af   :  { %v3574_v15 = vpack.c.bf16 %v3708_v8, %v3707_v9  ;;  %v3586_v16 = vpack.c.bf16 %v3713_v13, %v3712_v14  ;;  %v73_v14 = vld [vmem:[#allocation6 + $0x8] sm:$0xff] }
 0x1b0   :  { %3585 = vmatpush3.bf16.xpose.msk.msra.mxu0 %vm4095_vm3, %v3580_v63  ;;  %v536_v17 = vpop.permute.xlu0 %535  ;;  %v538_v18 = vpop.permute.xlu1 %537  ;;  %v842_v63 = vsel %vm303_vm1, %v87_v62, 0 }
 0x1b1   :  { %3576 = vmatprep.subr.msk.bf16.mxu1 %vm4095_vm3, %v3574_v15  ;;  %3293 = vmatprep.mubr.msk.f32.mxu1 %vm189_vm2, %v536_v17  ;;  %v72_v17 = vld [vmem:[#allocation6] sm:$0xff] }
 0x1b2   :  { %3588 = vmatprep.subr.msk.bf16.mxu0 %vm4095_vm3, %v3586_v16 }
 0x1b3   :  { %3579 = vmatpush3.bf16.xpose.msk.msra.mxu1 %vm4095_vm3, %v3574_v15 }
 0x1b4   :  { %v715_v19 = vpop.permute.xlu0 %714  ;;  %v717_v20 = vpop.permute.xlu1 %716  ;;  %3651 = vmatprep.subr.msk.bf16.mxu1 %vm303_vm1, %v87_v62 }
 0x1b5   :  { %3313 = vmatprep.mubr.msk.f32.mxu0 %vm189_vm2, %v715_v19 }
 0x1b8   :  { %3591 = vmatpush3.bf16.xpose.msk.msra.mxu0 %vm4095_vm3, %v3586_v16  ;;  %v540_v21 = vpop.permute.xlu0 %539  ;;  %v542_v22 = vpop.permute.xlu1 %541 }
 0x1ba   :  { %3294 = vmatmul.mubr.msk.f32.vlgmr.msra.gmra.mrb[12].mxu1 %vm189_vm2, %v538_v18 }
 0x1bb   :  { %3296 = vmatprep.mubr.msk.f32.mxu1 %vm189_vm2, %v540_v21  ;;  %3320 = vmatpush3.bf16.msra.mxu1 %v842_v63  ;;  %v3762_v63 = vld [vmem:[#allocation4 + $0x30] sm:$0xff]  }
 0x1bc   :  { %v719_v24 = vpop.permute.xlu0 %718  ;;  %v721_v26 = vpop.permute.xlu1 %720 }
 0x1be   :  { %3297 = vmatmul.mubr.msk.f32.gmra.mrb[14].mxu1 %vm189_vm2, %v542_v22 }
 0x1bf   :  { %3314 = vmatmul.mubr.msk.f32.vlgmr.msra.gmra.mrb[12].mxu0 %vm189_vm2, %v717_v20 }
 0x1c0   :  { %3316 = vmatprep.mubr.msk.f32.mxu0 %vm189_vm2, %v719_v24 }
 0x1c3   :  { %3317 = vmatmul.mubr.msk.f32.gmra.mrb[14].mxu0 %vm189_vm2, %v721_v26 }
 0x264   :  { %v3263_v27 = vpop.f32.mrb[0].mxu0 }
 0x265   :  { %v341_v28 = vpop.f32.mrb[1].mxu0 }
 0x266   :  { %v3264_v29 = vpop.f32.mrb[2].mxu0 }
 0x267   :  { %v1089_v30 = vpack.c.bf16 %v3264_v29, %v3263_v27  ;;  %v344_v32 = vpop.f32.mrb[3].mxu0  ;;  %v74_v29 = vld [vmem:[#allocation6 + $0x10] sm:$0xff] }
 0x268   :  { %v1088_v33 = vpack.c.bf16 %v344_v32, %v341_v28 }
 0x26a   :  { %3345 = vmatprep.subr.bf16.mxu0 %v1088_v33 }
 0x26b   :  { %3346 = vmatpush3.bf16.msra.mxu0 %v1088_v33 }
 0x26c   :  { %3347 = vmatprep.subr.bf16.mxu0 %v1089_v30 }
 0x26f   :  { %3348 = vmatpush3.bf16.msra.mxu0 %v1089_v30 }
 0x274   :  { %v4158_v34 = vpop.f32.mrb[4].mxu1 }
 0x275   :  { %v4160_v35 = vpop.f32.mrb[5].mxu1 }
 0x278   :  { %v4162_v36 = vpop.f32.mrb[6].mxu1  ;;  %v3275_v37 = vpop.f32.mrb[4].mxu0 }
 0x279   :  { %v4164_v38 = vpop.f32.mrb[7].mxu1  ;;  %899 = vrot.lane.b32.xlu1 %v3275_v37, %s3949_s5  ;;  %v454_v39 = vpop.f32.mrb[5].mxu0 }
 0x27a   :  { %897 = vrot.lane.b32.xlu0 %v454_v39, %s3949_s5 }
 0x27c   :  { %v3278_v40 = vpop.f32.mrb[6].mxu0  ;;  %v3283_v41 = vpop.f32.mrb[8].mxu1 }
 0x27d   :  { %v520_v42 = vpop.f32.mrb[9].mxu1  ;;  %903 = vrot.lane.b32.xlu1 %v3278_v40, %s3949_s5  ;;  %v464_v43 = vpop.f32.mrb[7].mxu0 }
 0x27e   :  { %v3284_v44 = vpop.f32.mrb[10].mxu1  ;;  %901 = vrot.lane.b32.xlu0 %v464_v43, %s3949_s5  ;;  %v4199_v43 = vld [vmem:[#allocation4] sm:$0xff]  }
 0x27f   :  { %v1091_v45 = vpack.c.bf16 %v3284_v44, %v3283_v41  ;;  %v523_v46 = vpop.f32.mrb[11].mxu1  ;;  %v75_v41 = vld [vmem:[#allocation6 + $0x18] sm:$0xff]  ;;  %3325 = vmatprep.subr.bf16.mxu1 %v4199_v43 }
 0x280   :  { %v1090_v47 = vpack.c.bf16 %v523_v46, %v520_v42  ;;  %v3303_v48 = vpop.f32.mrb[8].mxu0 }
 0x281   :  { %v699_v49 = vpop.f32.mrb[9].mxu0 }
 0x282   :  { %v3304_v50 = vpop.f32.mrb[10].mxu0  ;;  %3349 = vmatprep.subr.bf16.mxu0 %v1090_v47 }
 0x283   :  { %v1093_v51 = vpack.c.bf16 %v3304_v50, %v3303_v48  ;;  %v702_v52 = vpop.f32.mrb[11].mxu0  ;;  %3350 = vmatpush3.bf16.msra.mxu0 %v1090_v47  ;;  %v3757_v48 = vld [vmem:[#allocation4 + $0x8] sm:$0xff]  }
 0x284   :  { %v1092_v53 = vpack.c.bf16 %v702_v52, %v699_v49  ;;  %3351 = vmatprep.subr.bf16.mxu0 %v1091_v45 }
 0x287   :  { %3352 = vmatpush3.bf16.msra.mxu0 %v1091_v45 }
 0x288   :  { %3353 = vmatprep.subr.bf16.mxu0 %v1092_v53 }
 0x28b   :  { %3354 = vmatpush3.bf16.msra.mxu0 %v1092_v53 }
 0x28c   :  { %3355 = vmatprep.subr.bf16.mxu0 %v1093_v51 }
 0x28d   :  { %v3295_v54 = vpop.f32.mrb[12].mxu1 }
 0x28e   :  { %v633_v55 = vpop.f32.mrb[13].mxu1  ;;  %915 = vrot.lane.b32.xlu1 %v3295_v54, %s3934_s22 }
 0x28f   :  { %913 = vrot.lane.b32.xlu0 %v633_v55, %s3934_s22  ;;  %3356 = vmatpush3.bf16.msra.mxu0 %v1093_v51  ;;  %v3758_v51 = vld [vmem:[#allocation4 + $0x10] sm:$0xff]  }
 0x291   :  { %v3298_v56 = vpop.f32.mrb[14].mxu1 }
 0x292   :  { %v3315_v57 = vpop.f32.mrb[12].mxu0  ;;  %v643_v58 = vpop.f32.mrb[15].mxu1 }
 0x293   :  { %931 = vrot.lane.b32.xlu1 %v3315_v57, %s3940_s2  ;;  %v812_v59 = vpop.f32.mrb[13].mxu0 }
 0x294   :  { %929 = vrot.lane.b32.xlu0 %v812_v59, %s3940_s2 }
 0x296   :  { %v3318_v60 = vpop.f32.mrb[14].mxu0 }
 0x297   :  { %919 = vrot.lane.b32.xlu1 %v3298_v56, %s3934_s22  ;;  %v822_v61 = vpop.f32.mrb[15].mxu0  ;;  %v3760_v56 = vld [vmem:[#allocation4 + $0x20] sm:$0xff]  }
 0x298   :  { %917 = vrot.lane.b32.xlu0 %v643_v58, %s3934_s22 }
 0x29b   :  { %935 = vrot.lane.b32.xlu1 %v3318_v60, %s3940_s2 }
 0x29c   :  { %933 = vrot.lane.b32.xlu0 %v822_v61, %s3940_s2  ;;  %v3761_v61 = vld [vmem:[#allocation4 + $0x28] sm:$0xff]  }
 0x2a0   :  { %831 = vrot.lane.b32.xlu0 %v4041_v23, %s3950_s6 }
 0x2eb   :  { %v900_v0 = vpop.permute.xlu1 %899 }
 0x2ec   :  { %v898_v1 = vpop.permute.xlu0 %897  ;;  %v942_v13 = vsel %vm119_vm0, %v4158_v34, %v900_v0  ;;  %v3763_v0 = vld [vmem:[#allocation4 + $0x38] sm:$0xff]  }
 0x2ed   :  { %v941_v23 = vsel %vm119_vm0, %v4160_v35, %v898_v1 }
 0x2ef   :  { %v904_v4 = vpop.permute.xlu1 %903 }
 0x2f0   :  { %v902_v7 = vpop.permute.xlu0 %901  ;;  %v944_v34 = vsel %vm119_vm0, %v4162_v36, %v904_v4 }
 0x2f1   :  { %v943_v28 = vsel %vm119_vm0, %v4164_v38, %v902_v7 }
 0x300   :  { %v916_v8 = vpop.permute.xlu1 %915 }
 0x301   :  { %v914_v9 = vpop.permute.xlu0 %913  ;;  %v947_v15 = vsel %vm945_vm4, %v942_v13, %v916_v8 }
 0x302   :  { %v946_v18 = vsel %vm945_vm4, %v941_v23, %v914_v9 }
 0x305   :  { %v932_v16 = vpop.permute.xlu1 %931 }
 0x306   :  { %v952_v19 = vsel %vm950_vm5, %v947_v15, %v932_v16  ;;  %v930_v20 = vpop.permute.xlu0 %929 }
 0x307   :  { %v951_v21 = vsel %vm950_vm5, %v946_v18, %v930_v20  ;;  %v956_v22 = vadd.f32 %v952_v19, %v73_v14 }
 0x308   :  { %v955_v24 = vadd.f32 %v951_v21, %v72_v17 }
 0x309   :  { %v920_v26 = vpop.permute.xlu1 %919  ;;  %961 = vmax.xlane.f32.xlu0 %v956_v22 }
 0x30a   :  { %v918_v27 = vpop.permute.xlu0 %917  ;;  %959 = vmax.xlane.f32.xlu1 %v955_v24  ;;  %v949_v37 = vsel %vm945_vm4, %v944_v34, %v920_v26 }
 0x30b   :  { %v948_v30 = vsel %vm945_vm4, %v943_v28, %v918_v27 }
 0x30d   :  { %v936_v32 = vpop.permute.xlu1 %935 }
 0x30e   :  { %v934_v33 = vpop.permute.xlu0 %933  ;;  %v954_v40 = vsel %vm950_vm5, %v949_v37, %v936_v32 }
 0x30f   :  { %v953_v35 = vsel %vm950_vm5, %v948_v30, %v934_v33  ;;  %v958_v38 = vadd.f32 %v954_v40, %v75_v41  ;;  %v4207_v33 = vsub.s32 1, %v4024_v10 }
 0x310   :  { %v957_v39 = vadd.f32 %v953_v35, %v74_v29 }
 0x311   :  { %v1148_v34 = vrot.slane %v4029_v12, %v4207_v33 }
 0x312   :  { %v832_v42 = vpop.permute.xlu0 %831  ;;  %963 = vmax.xlane.f32.xlu1 %v957_v39 }
 0x313   :  { %3321 = vmatprep.mubr.msk.bf16.mxu1 %vm189_vm2, %v832_v42 }
 0x316   :  { %965 = vmax.xlane.f32.xlu1 %v958_v38 }
 0x31f   :  { %833 = vrot.lane.b32.xlu0 %v4050_v25, %s3950_s6  ;;  %v3759_v25 = vld [vmem:[#allocation4 + $0x18] sm:$0xff]  }
 0x396   :  { %v962_v36 = vpop.xlane.xlu0 %961 }
 0x397   :  { %v968_v44 = vsub.f32 %v956_v22, %v962_v36  ;;  %v960_v45 = vpop.xlane.xlu1 %959 }
 0x398   :  { %v967_v46 = vsub.f32 %v955_v24, %v960_v45 }
 0x399   :  { %v973_v47 = vmul.f32 1.442695, %v968_v44 }
 0x39a   :  { %v971_v49 = vmul.f32 1.442695, %v967_v46  ;;  %v834_v50 = vpop.permute.xlu0 %833 }
 0x39b   :  { %3778 = vpow2.f32 %v973_v47  ;;  %3322 = vmatmul.mubr.msk.bf16.vlgmr.msra.gmra.mrb[16].mxu1 %vm189_vm2, %v834_v50 }
 0x39c   :  { %3780 = vpow2.f32 %v971_v49  ;;  %3326 = vmatpush3.bf16.msra.mxu1 %v4199_v43 }
 0x39d   :  { %3327 = vmatprep.subr.bf16.mxu1 %v3757_v48 }
 0x39f   :  { %v964_v52 = vpop.xlane.xlu1 %963 }
 0x3a0   :  { %3328 = vmatpush3.bf16.msra.mxu1 %v3757_v48  ;;  %v969_v58 = vsub.f32 %v957_v39, %v964_v52 }
 0x3a1   :  { %3329 = vmatprep.subr.bf16.mxu1 %v3758_v51 }
 0x3a2   :  { %v975_v62 = vmul.f32 1.442695, %v969_v58 }
 0x3a3   :  { %v966_v53 = vpop.xlane.xlu1 %965 }
 0x3a4   :  { %v970_v54 = vsub.f32 %v958_v38, %v966_v53  ;;  %3330 = vmatpush3.bf16.msra.mxu1 %v3758_v51 }
 0x3a5   :  { %v3779_v55 = vpop.eup %3778  ;;  %3331 = vmatprep.subr.bf16.mxu1 %v3759_v25 }
 0x3a6   :  { %v3781_v57 = vpop.eup %3780  ;;  %v977_v60 = vmul.f32 1.442695, %v970_v54 }
 0x3a7   :  { %v979_v59 = vpack.c.bf16 %v3779_v55, %v3781_v57 }
 0x3a8   :  { %3332 = vmatpush3.bf16.msra.mxu1 %v3759_v25  ;;  %3782 = vpow2.f32 %v977_v60 }
 0x3a9   :  { %3341 = vmatprep.mubr.bf16.mxu1 %v979_v59  ;;  %3333 = vmatprep.subr.bf16.mxu1 %v3760_v56  ;;  %3784 = vpow2.f32 %v975_v62 }
 0x3ac   :  { %3334 = vmatpush3.bf16.msra.mxu1 %v3760_v56 }
 0x3ad   :  { %3335 = vmatprep.subr.bf16.mxu1 %v3761_v61 }
 0x3b0   :  { %3336 = vmatpush3.bf16.msra.mxu1 %v3761_v61 }
 0x3b1   :  { %3337 = vmatprep.subr.bf16.mxu1 %v3762_v63 }
 0x3b2   :  { %v3783_v1 = vpop.eup %3782 }
 0x3b3   :  { %v3785_v4 = vpop.eup %3784 }
 0x3b4   :  { %3338 = vmatpush3.bf16.msra.mxu1 %v3762_v63  ;;  %v980_v7 = vpack.c.bf16 %v3783_v1, %v3785_v4 }
 0x3b5   :  { %3339 = vmatprep.subr.bf16.mxu1 %v3763_v0 }
 0x3b8   :  { %3340 = vmatpush3.bf16.msra.mxu1 %v3763_v0 }
 0x3bb   :  { %3342 = vmatmul.mubr.bf16.vlgmr.msra.gmra.mrb[20].mxu1 %v980_v7  ;;  %v3764_v7 = vld [vmem:[#allocation4 + $0x60] sm:$0xff]  }
 0x3bc   :  { %3365 = vmatprep.subr.bf16.mxu1 %v3764_v7 }
 0x3bd   :  { %3366 = vmatpush3.bf16.msra.mxu1 %v3764_v7 }
 0x46e   :  { %v3323_v8 = vpop.f32.mrb[16].mxu1 }
 0x46f   :  { %v878_v9 = vpop.f32.mrb[17].mxu1 }
 0x470   :  { %v3324_v13 = vpop.f32.mrb[18].mxu1 }
 0x471   :  { %v1095_v14 = vpack.c.bf16 %v3324_v13, %v3323_v8  ;;  %v881_v23 = vpop.f32.mrb[19].mxu1  ;;  %v3765_v8 = vld [vmem:[#allocation4 + $0x68] sm:$0xff]   ;;  %v3767_v13 = vld [vmem:[#allocation4 + $0x78] sm:$0xff]  }
 0x472   :  { %v1094_v15 = vpack.c.bf16 %v881_v23, %v878_v9  ;;  %3367 = vmatprep.subr.bf16.mxu1 %v3765_v8  ;;  %v3766_v9 = vld [vmem:[#allocation4 + $0x70] sm:$0xff]  }
 0x473   :  { %3368 = vmatpush3.bf16.msra.mxu1 %v3765_v8 }
 0x474   :  { %3357 = vmatprep.subr.bf16.mxu0 %v1094_v15 }
 0x475   :  { %3358 = vmatpush3.bf16.msra.mxu0 %v1094_v15 }
 0x476   :  { %3359 = vmatprep.subr.bf16.mxu0 %v1095_v14 }
 0x479   :  { %3360 = vmatpush3.bf16.msra.mxu0 %v1095_v14 }
 0x47a   :  { %3373 = vmatprep.subr.bf16.mxu0 %v3766_v9 }
 0x48e   :  { %v3343_v16 = vpop.f32.mrb[20].mxu1 }
 0x48f   :  { %3786 = vrcp.f32 %v3343_v16  ;;  %v1063_v17 = vpop.f32.mrb[21].mxu1 }
 0x490   :  { %3788 = vrcp.f32 %v1063_v17  ;;  %v3344_v18 = vpop.f32.mrb[22].mxu1 }
 0x491   :  { %3790 = vrcp.f32 %v3344_v18  ;;  %v1066_v19 = vpop.f32.mrb[23].mxu1 }
 0x492   :  { %3792 = vrcp.f32 %v1066_v19 }
 0x499   :  { %v3787_v20 = vpop.eup %3786 }
 0x49a   :  { %v3789_v21 = vpop.eup %3788  ;;  %v1084_v26 = vmul.f32 %v3787_v20, %v3785_v4 }
 0x49b   :  { %v3791_v22 = vpop.eup %3790  ;;  %v1082_v28 = vmul.f32 %v3789_v21, %v3781_v57 }
 0x49c   :  { %v3793_v24 = vpop.eup %3792  ;;  %v1085_v27 = vmul.f32 %v3791_v22, %v3783_v1 }
 0x49d   :  { %v1083_v29 = vmul.f32 %v3793_v24, %v3779_v55 }
 0x49e   :  { %v1087_v30 = vpack.c.bf16 %v1085_v27, %v1084_v26  ;;  %v1212_v27 = vsub.s32 2, %v4024_v10 }
 0x49f   :  { %v1086_v32 = vpack.c.bf16 %v1083_v29, %v1082_v28 }
 0x4a1   :  { %3361 = vmatprep.mubr.bf16.mxu0 %v1086_v32  ;;  %v1213_v32 = vrot.slane %v4029_v12, %v1212_v27 }
 0x4a2   :  { %3362 = vmatmul.mubr.bf16.vlgmr.msra.gmra.mrb[16].mxu0 %v1087_v30 }
 0x4a3   :  { %3374 = vmatpush3.bf16.msra.mxu0 %v3766_v9 }
 0x4a4   :  { %3375 = vmatprep.subr.bf16.mxu0 %v3767_v13 }
 0x4a7   :  { %3376 = vmatpush3.bf16.msra.mxu0 %v3767_v13 }
 0x575   :  { %v3363_v35 = vpop.f32.mrb[16].mxu0 }
 0x576   :  { %v1151_v37 = vadd.f32 %v3363_v35, %v1148_v34  ;;  %v1130_v39 = vpop.f32.mrb[17].mxu0 }
 0x577   :  { %v1149_v40 = vadd.f32 %v1148_v34, %v1130_v39  ;;  %v3364_v41 = vpop.f32.mrb[18].mxu0 }
 0x578   :  { %v1133_v42 = vpop.f32.mrb[19].mxu0  ;;  %v1155_v38 = vadd.f32 %v1151_v37, %v4015_v5  ;;  %v1152_v46 = vadd.f32 %v3364_v41, %v1148_v34 }
 0x579   :  { %v1150_v36 = vadd.f32 %v1148_v34, %v1133_v42  ;;  %v1153_v45 = vadd.f32 %v1149_v40, %v4009_v2  ;;  %v1220_v34 = vsub.s32 3, %v4024_v10 }
 0x57a   :  { %v1163_v44 = vsel %vm119_vm0, %v1155_v38, 0.0  ;;  %v1156_v50 = vadd.f32 %v1152_v46, %v4017_v6 }
 0x57b   :  { %1164 = vadd.xlane.f32.xlu1 %v1163_v44  ;;  %v1157_v47 = vsel %vm119_vm0, %v1153_v45, 0.0  ;;  %v1154_v48 = vadd.f32 %v1150_v36, %v4011_v3  ;;  %v1221_v42 = vrot.slane %v4029_v12, %v1220_v34 }
 0x57c   :  { %v1166_v51 = vsel %vm119_vm0, %v1156_v50, 0.0 }
 0x57d   :  { %v1160_v49 = vsel %vm119_vm0, %v1154_v48, 0.0 }
 0x57f   :  { %1158 = vadd.xlane.f32.xlu1 %v1157_v47 }
 0x583   :  { %1161 = vadd.xlane.f32.xlu1 %v1160_v49 }
 0x587   :  { %1167 = vadd.xlane.f32.xlu1 %v1166_v51 }
 0x608   :  { %v1165_v5 = vpop.xlane.xlu1 %1164 }
 0x609   :  { %v1172_v52 = vmul.f32 0.03125, %v1165_v5  ;;  %v3768_v5 = vld [vmem:[#allocation4 + $0x80] sm:$0xff]  }
 0x60a   :  { %3377 = vmatprep.subr.bf16.mxu0 %v3768_v5 }
 0x60b   :  { %v1176_v25 = vsub.f32 %v1155_v38, %v1172_v52  ;;  %3378 = vmatpush3.bf16.msra.mxu0 %v3768_v5  ;;  %v3769_v52 = vld [vmem:[#allocation4 + $0x88] sm:$0xff]   ;;  %v3771_v5 = vld [vmem:[#allocation4 + $0x98] sm:$0xff]  }
 0x60c   :  { %v1159_v53 = vpop.xlane.xlu1 %1158  ;;  %3379 = vmatprep.subr.bf16.mxu0 %v3769_v52 }
 0x60d   :  { %v1170_v2 = vmul.f32 0.03125, %v1159_v53  ;;  %v1180_v54 = vmul.f32 %v1176_v25, %v1176_v25 }
 0x60f   :  { %v1174_v55 = vsub.f32 %v1153_v45, %v1170_v2  ;;  %v1188_v56 = vsel %vm119_vm0, %v1180_v54, 0.0  ;;  %3380 = vmatpush3.bf16.msra.mxu0 %v3769_v52 }
 0x610   :  { %1189 = vadd.xlane.f32.xlu1 %v1188_v56  ;;  %v1162_v3 = vpop.xlane.xlu1 %1161 }
 0x611   :  { %v1171_v57 = vmul.f32 0.03125, %v1162_v3  ;;  %v1178_v58 = vmul.f32 %v1174_v55, %v1174_v55 }
 0x613   :  { %v1175_v59 = vsub.f32 %v1154_v48, %v1171_v57  ;;  %v1182_v6 = vsel %vm119_vm0, %v1178_v58, 0.0 }
 0x614   :  { %1183 = vadd.xlane.f32.xlu0 %v1182_v6  ;;  %v1168_v60 = vpop.xlane.xlu1 %1167 }
 0x615   :  { %v1173_v61 = vmul.f32 0.03125, %v1168_v60  ;;  %v1179_v62 = vmul.f32 %v1175_v59, %v1175_v59 }
 0x617   :  { %v1177_v63 = vsub.f32 %v1156_v50, %v1173_v61  ;;  %v1185_v0 = vsel %vm119_vm0, %v1179_v62, 0.0 }
 0x618   :  { %1186 = vadd.xlane.f32.xlu1 %v1185_v0 }
 0x619   :  { %v1181_v1 = vmul.f32 %v1177_v63, %v1177_v63 }
 0x61b   :  { %v1191_v4 = vsel %vm119_vm0, %v1181_v1, 0.0  ;;  %v1386_v1 = vsub.s32 5, %v4024_v10 }
 0x61c   :  { %1192 = vadd.xlane.f32.xlu1 %v1191_v4 }
 0x61d   :  { %v1387_v4 = vrot.slane %v4029_v12, %v1386_v1 }
 0x69d   :  { %v1190_v14 = vpop.xlane.xlu1 %1189 }
 0x69e   :  { %v1196_v23 = vmul.f32 0.03125, %v1190_v14 }
 0x6a0   :  { %v1200_v17 = vadd.f32 1e-05, %v1196_v23 }
 0x6a1   :  { %v1184_v15 = vpop.xlane.xlu0 %1183 }
 0x6a2   :  { %v1194_v16 = vmul.f32 0.03125, %v1184_v15 }
 0x6a4   :  { %v1198_v18 = vadd.f32 1e-05, %v1194_v16 }
 0x6a5   :  { %v1187_v19 = vpop.xlane.xlu1 %1186 }
 0x6a6   :  { %3794 = vrsqrt.f32 %v1198_v18  ;;  %v1195_v20 = vmul.f32 0.03125, %v1187_v19 }
 0x6a7   :  { %3796 = vrsqrt.f32 %v1200_v17 }
 0x6a8   :  { %v1199_v21 = vadd.f32 1e-05, %v1195_v20 }
 0x6a9   :  { %v1193_v22 = vpop.xlane.xlu1 %1192 }
 0x6aa   :  { %3798 = vrsqrt.f32 %v1199_v21  ;;  %v1197_v24 = vmul.f32 0.03125, %v1193_v22 }
 0x6ac   :  { %v1201_v26 = vadd.f32 1e-05, %v1197_v24 }
 0x6ae   :  { %3800 = vrsqrt.f32 %v1201_v26 }
 0x6b0   :  { %v3795_v28 = vpop.eup %3794 }
 0x6b1   :  { %v1206_v29 = vmul.f32 %v3795_v28, %v1174_v55  ;;  %v3797_v30 = vpop.eup %3796 }
 0x6b2   :  { %v1208_v37 = vmul.f32 %v3797_v30, %v1176_v25  ;;  %v1230_v25 = vsub.s32 4, %v4024_v10 }
 0x6b3   :  { %v1214_v40 = vmul.f32 %v1213_v32, %v1206_v29 }
 0x6b4   :  { %v3799_v35 = vpop.eup %3798  ;;  %v1216_v36 = vmul.f32 %v1213_v32, %v1208_v37  ;;  %v1231_v53 = vrot.slane %v4029_v12, %v1230_v25 }
 0x6b5   :  { %v1207_v39 = vmul.f32 %v3799_v35, %v1175_v59  ;;  %v1222_v45 = vadd.f32 %v1221_v42, %v1214_v40 }
 0x6b6   :  { %v1224_v49 = vadd.f32 %v1221_v42, %v1216_v36 }
 0x6b7   :  { %v1215_v41 = vmul.f32 %v1213_v32, %v1207_v39 }
 0x6b8   :  { %v3801_v38 = vpop.eup %3800 }
 0x6b9   :  { %v1209_v44 = vmul.f32 %v3801_v38, %v1177_v63  ;;  %v1223_v46 = vadd.f32 %v1221_v42, %v1215_v41 }
 0x6bb   :  { %v1217_v47 = vmul.f32 %v1213_v32, %v1209_v44  ;;  %v1226_v48 = vpack.c.bf16 %v1223_v46, %v1222_v45 }
 0x6bd   :  { %3369 = vmatprep.mubr.msk.bf16.mxu1 %vm119_vm0, %v1226_v48  ;;  %v1225_v50 = vadd.f32 %v1221_v42, %v1217_v47 }
 0x6bf   :  { %v1227_v51 = vpack.c.bf16 %v1225_v50, %v1224_v49 }
 0x6c1   :  { %3370 = vmatmul.mubr.msk.bf16.vlgmr.msra.gmra.mrb[24].mxu1 %vm119_vm0, %v1227_v51  ;;  %v3770_v51 = vld [vmem:[#allocation4 + $0x90] sm:$0xff]  }
 0x6c2   :  { %3385 = vmatprep.subr.bf16.mxu1 %v3770_v51 }
 0x6c3   :  { %3386 = vmatpush3.bf16.msra.mxu1 %v3770_v51 }
 0x6c4   :  { %3387 = vmatprep.subr.bf16.mxu1 %v3771_v5 }
 0x6c7   :  { %3388 = vmatpush3.bf16.msra.mxu1 %v3771_v5 }
 0x794   :  { %v3371_v2 = vpop.f32.mrb[24].mxu1 }
 0x795   :  { %v1293_v54 = vadd.f32 %v3371_v2, %v1231_v53  ;;  %v1284_v55 = vpop.f32.mrb[25].mxu1 }
 0x796   :  { %v1285_v56 = vadd.f32 %v1284_v55, %v1231_v53  ;;  %v3372_v3 = vpop.f32.mrb[26].mxu1 }
 0x797   :  { %v1296_v57 = vadd.f32 %v3372_v3, %v1231_v53  ;;  %v1287_v58 = vpop.f32.mrb[27].mxu1  ;;  %v1301_v6 = vmax.f32 %v1293_v54, 0.0 }
 0x798   :  { %v1288_v59 = vadd.f32 %v1287_v58, %v1231_v53  ;;  %v1299_v61 = vmax.f32 %v1285_v56, 0.0 }
 0x799   :  { %v1302_v60 = vmax.f32 %v1296_v57, 0.0 }
 0x79a   :  { %v1300_v62 = vmax.f32 %v1288_v59, 0.0 }
 0x79b   :  { %v1304_v63 = vpack.c.bf16 %v1302_v60, %v1301_v6 }
 0x79c   :  { %v1303_v0 = vpack.c.bf16 %v1300_v62, %v1299_v61  ;;  %v1450_v61 = vsub.s32 6, %v4024_v10 }
 0x79e   :  { %3381 = vmatprep.mubr.msk.bf16.mxu0 %vm945_vm4, %v1303_v0  ;;  %v3850_v0 = vld [vmem:[#allocation6 + $0x20] sm:$0xff] }
 0x79f   :  { %3382 = vmatmul.mubr.msk.bf16.vlgmr.msra.gmra.mrb[20].mxu0 %vm945_vm4, %v1304_v63 }
 0x872   :  { %v3383_v7 = vpop.f32.mrb[20].mxu0 }
 0x873   :  { %v1390_v8 = vadd.f32 %v3383_v7, %v1387_v4  ;;  %v1369_v9 = vpop.f32.mrb[21].mxu0  ;;  %v1458_v7 = vsub.s32 7, %v4024_v10 }
 0x874   :  { %v1388_v13 = vadd.f32 %v1387_v4, %v1369_v9  ;;  %v3384_v14 = vpop.f32.mrb[22].mxu0 }
 0x875   :  { %v1372_v23 = vpop.f32.mrb[23].mxu0  ;;  %v1394_v15 = vadd.f32 %v1390_v8, %v1224_v49  ;;  %v1391_v19 = vadd.f32 %v3384_v14, %v1387_v4 }
 0x876   :  { %v1389_v16 = vadd.f32 %v1387_v4, %v1372_v23  ;;  %v1392_v18 = vadd.f32 %v1388_v13, %v1222_v45  ;;  %v1451_v4 = vrot.slane %v3850_v0, %v1450_v61 }
 0x877   :  { %v1402_v17 = vsel %vm119_vm0, %v1394_v15, 0.0  ;;  %v1395_v12 = vadd.f32 %v1391_v19, %v1225_v50 }
 0x878   :  { %1403 = vadd.xlane.f32.xlu1 %v1402_v17  ;;  %v1396_v20 = vsel %vm119_vm0, %v1392_v18, 0.0  ;;  %v1393_v21 = vadd.f32 %v1389_v16, %v1223_v46 }
 0x879   :  { %v1405_v24 = vsel %vm119_vm0, %v1395_v12, 0.0 }
 0x87a   :  { %v1399_v22 = vsel %vm119_vm0, %v1393_v21, 0.0 }
 0x87c   :  { %1397 = vadd.xlane.f32.xlu1 %v1396_v20 }
 0x880   :  { %1400 = vadd.xlane.f32.xlu1 %v1399_v22 }
 0x884   :  { %1406 = vadd.xlane.f32.xlu1 %v1405_v24 }
 0x905   :  { %v1404_v26 = vpop.xlane.xlu1 %1403 }
 0x906   :  { %v1410_v28 = vmul.f32 0.03125, %v1404_v26 }
 0x908   :  { %v1414_v32 = vsub.f32 %v1394_v15, %v1410_v28  ;;  %v1459_v15 = vrot.slane %v3850_v0, %v1458_v7 }
 0x909   :  { %v1398_v29 = vpop.xlane.xlu1 %1397 }
 0x90a   :  { %v1408_v30 = vmul.f32 0.03125, %v1398_v29  ;;  %v1418_v38 = vmul.f32 %v1414_v32, %v1414_v32  ;;  %v1468_v29 = vld [vmem:[#allocation4 + $0xa0] sm:$0xf] }
 0x90b   :  { %3652 = vmatprep.subr.msk.bf16.mxu0 %vm303_vm1, %v1468_v29 }
 0x90c   :  { %v1412_v35 = vsub.f32 %v1392_v18, %v1408_v30  ;;  %v1426_v47 = vsel %vm119_vm0, %v1418_v38, 0.0  ;;  %v1686_v30 = vsel %vm303_vm1, %v1468_v29, 0 }
 0x90d   :  { %v1401_v37 = vpop.xlane.xlu1 %1400  ;;  %3408 = vmatpush3.bf16.msra.mxu0 %v1686_v30 }
 0x90e   :  { %v1409_v39 = vmul.f32 0.03125, %v1401_v37  ;;  %v1416_v40 = vmul.f32 %v1412_v35, %v1412_v35 }
 0x910   :  { %v1413_v41 = vsub.f32 %v1393_v21, %v1409_v39  ;;  %v1420_v42 = vsel %vm119_vm0, %v1416_v40, 0.0 }
 0x911   :  { %1421 = vadd.xlane.f32.xlu0 %v1420_v42  ;;  %v1407_v36 = vpop.xlane.xlu1 %1406 }
 0x912   :  { %v1411_v44 = vmul.f32 0.03125, %v1407_v36  ;;  %v1417_v45 = vmul.f32 %v1413_v41, %v1413_v41 }
 0x914   :  { %v1415_v46 = vsub.f32 %v1395_v12, %v1411_v44  ;;  %v1423_v48 = vsel %vm119_vm0, %v1417_v45, 0.0 }
 0x915   :  { %1427 = vadd.xlane.f32.xlu0 %v1426_v47  ;;  %1424 = vadd.xlane.f32.xlu1 %v1423_v48 }
 0x916   :  { %v1419_v49 = vmul.f32 %v1415_v46, %v1415_v46 }
 0x918   :  { %v1429_v50 = vsel %vm119_vm0, %v1419_v49, 0.0 }
 0x919   :  { %1430 = vadd.xlane.f32.xlu1 %v1429_v50 }
 0x99e   :  { %v1422_v52 = vpop.xlane.xlu0 %1421 }
 0x99f   :  { %v1432_v53 = vmul.f32 0.03125, %v1422_v52 }
 0x9a1   :  { %v1436_v2 = vadd.f32 1e-05, %v1432_v53 }
 0x9a2   :  { %v1428_v54 = vpop.xlane.xlu0 %1427  ;;  %v1425_v55 = vpop.xlane.xlu1 %1424 }
 0x9a3   :  { %3802 = vrsqrt.f32 %v1436_v2  ;;  %v1434_v56 = vmul.f32 0.03125, %v1428_v54  ;;  %v1433_v3 = vmul.f32 0.03125, %v1425_v55 }
 0x9a5   :  { %v1438_v57 = vadd.f32 1e-05, %v1434_v56  ;;  %v1437_v58 = vadd.f32 1e-05, %v1433_v3 }
 0x9a6   :  { %v1431_v59 = vpop.xlane.xlu1 %1430 }
 0x9a7   :  { %3804 = vrsqrt.f32 %v1438_v57  ;;  %v1435_v6 = vmul.f32 0.03125, %v1431_v59 }
 0x9a8   :  { %3806 = vrsqrt.f32 %v1437_v58 }
 0x9a9   :  { %v1439_v60 = vadd.f32 1e-05, %v1435_v6 }
 0x9ab   :  { %3808 = vrsqrt.f32 %v1439_v60 }
 0x9ad   :  { %v3803_v62 = vpop.eup %3802 }
 0x9ae   :  { %v1444_v63 = vmul.f32 %v3803_v62, %v1412_v35 }
 0x9b0   :  { %v1452_v23 = vmul.f32 %v1451_v4, %v1444_v63  ;;  %v1469_v63 = vld [vmem:[#allocation4 + $0xa4] sm:$0xf] }
 0x9b1   :  { %v3805_v8 = vpop.eup %3804 }
 0x9b2   :  { %v3807_v9 = vpop.eup %3806  ;;  %v1446_v13 = vmul.f32 %v3805_v8, %v1414_v32  ;;  %v4257_v20 = vadd.f32 %v1459_v15, %v1452_v23  ;;  %v4273_v32 = vld [vmem:[#allocation6 + $0x28] sm:$0xff] }
 0x9b3   :  { %v1445_v14 = vmul.f32 %v3807_v9, %v1413_v41  ;;  %v1490_v35 = vrot.slane %v4273_v32, %v4027_v11 }
 0x9b4   :  { %v1454_v18 = vmul.f32 %v1451_v4, %v1446_v13 }
 0x9b5   :  { %v3809_v16 = vpop.eup %3808  ;;  %v1453_v17 = vmul.f32 %v1451_v4, %v1445_v14  ;;  %v1470_v14 = vld [vmem:[#allocation4 + $0xa8] sm:$0xf] }
 0x9b6   :  { %v1447_v19 = vmul.f32 %v3809_v16, %v1415_v46  ;;  %v4263_v24 = vadd.f32 %v1459_v15, %v1454_v18  ;;  %v1865_v16 = vsel %vm303_vm1, %v1469_v63, 0 }
 0x9b7   :  { %v4259_v21 = vadd.f32 %v1459_v15, %v1453_v17 }
 0x9b8   :  { %v1455_v22 = vmul.f32 %v1451_v4, %v1447_v19 }
 0x9b9   :  { %v1485_v12 = vpack.c.bf16 %v4259_v21, %v4257_v20 }
 0x9ba   :  { %v4265_v26 = vadd.f32 %v1459_v15, %v1455_v22 }
 0x9bb   :  { %3389 = vmatprep.mubr.msk.bf16.mxu1 %vm119_vm0, %v1485_v12 }
 0x9bc   :  { %v1486_v28 = vpack.c.bf16 %v4265_v26, %v4263_v24 }
 0x9be   :  { %3390 = vmatmul.mubr.msk.bf16.vlgmr.msra.gmra.mrb[28].mxu1 %vm119_vm0, %v1486_v28  ;;  %v2044_v28 = vsel %vm303_vm1, %v1470_v14, 0 }
 0xa91   :  { %v3391_v37 = vpop.f32.mrb[28].mxu1 }
 0xa92   :  { %v1543_v39 = vpop.f32.mrb[29].mxu1  ;;  %v4283_v45 = vadd.f32 %v3391_v37, %v1490_v35 }
 0xa93   :  { %v1544_v40 = vadd.f32 %v1543_v39, %v1490_v35  ;;  %v3392_v41 = vpop.f32.mrb[30].mxu1 }
 0xa94   :  { %v1546_v42 = vpop.f32.mrb[31].mxu1  ;;  %v4280_v36 = vadd.f32 %v3392_v41, %v1490_v35 }
 0xa95   :  { %v4277_v38 = vadd.f32 %v1546_v42, %v1490_v35  ;;  %3401 = vmatprep.mubr.msk.f32.mxu1 %vm189_vm2, %v1544_v40 }
 0xa96   :  { %v3724_v46 = vpack.i.bf16 %v4280_v36, %v4283_v45  ;;  %v4297_v48 = vpack.c.bf16 %v4280_v36, %v4283_v45 }
 0xa97   :  { %v3719_v44 = vpack.i.bf16 %v4277_v38, %v1544_v40  ;;  %v4290_v47 = vpack.c.bf16 %v4277_v38, %v1544_v40 }
 0xa99   :  { %3720 = vrot.lane.b32.xlu1 %v3719_v44, %s3941_s24  ;;  %3715 = vrot.lane.b32.xlu0 %v3719_v44, %s3940_s2 }
 0xa9d   :  { %3725 = vrot.lane.b32.xlu0 %v3724_v46, %s3940_s2  ;;  %1675 = vrot.lane.b32.xlu1 %v4290_v47, %s3934_s22 }
 0xaa1   :  { %1737 = vrot.lane.b32.xlu0 %v1544_v40, %s3942_s25  ;;  %1677 = vrot.lane.b32.xlu1 %v4297_v48, %s3934_s22 }
 0xaa5   :  { %1741 = vrot.lane.b32.xlu0 %v4283_v45, %s3942_s25  ;;  %3730 = vrot.lane.b32.xlu1 %v3724_v46, %s3941_s24 }
 0xaa9   :  { %3735 = vrot.lane.b32.xlu0 %v3719_v44, %s3943_s26  ;;  %1739 = vrot.lane.b32.xlu1 %v4277_v38, %s3942_s25 }
 0xaad   :  { %1854 = vrot.lane.b32.xlu0 %v4290_v47, %s3945_s28  ;;  %1743 = vrot.lane.b32.xlu1 %v4280_v36, %s3942_s25 }
 0xab1   :  { %2033 = vrot.lane.b32.xlu0 %v4290_v47, %s3946_s29  ;;  %3740 = vrot.lane.b32.xlu1 %v3719_v44, %s3944_s27 }
 0xab5   :  { %3745 = vrot.lane.b32.xlu0 %v3724_v46, %s3943_s26  ;;  %1856 = vrot.lane.b32.xlu1 %v4297_v48, %s3945_s28 }
 0xab9   :  { %1916 = vrot.lane.b32.xlu0 %v1544_v40, %s3947_s30  ;;  %2035 = vrot.lane.b32.xlu1 %v4297_v48, %s3946_s29 }
 0xabd   :  { %2095 = vrot.lane.b32.xlu0 %v1544_v40, %s3948_s4  ;;  %3750 = vrot.lane.b32.xlu1 %v3724_v46, %s3944_s27 }
 0xac1   :  { %1920 = vrot.lane.b32.xlu0 %v4283_v45, %s3947_s30  ;;  %1918 = vrot.lane.b32.xlu1 %v4277_v38, %s3947_s30 }
 0xac5   :  { %2099 = vrot.lane.b32.xlu0 %v4283_v45, %s3948_s4  ;;  %2097 = vrot.lane.b32.xlu1 %v4277_v38, %s3948_s4 }
 0xac9   :  { %1922 = vrot.lane.b32.xlu1 %v4280_v36, %s3947_s30 }
 0xacd   :  { %2101 = vrot.lane.b32.xlu1 %v4280_v36, %s3948_s4 }
 0xb0b   :  { %v3721_v49 = vpop.permute.xlu1 %3720  ;;  %v3716_v50 = vpop.permute.xlu0 %3715 }
 0xb0c   :  { %v3723_v51 = vunpack.i.h.bf16 %v3721_v49  ;;  %v3722_v5 = vunpack.i.l.bf16 %v3721_v49  ;;  %v3718_v52 = vunpack.i.h.bf16 %v3716_v50  ;;  %v3717_v53 = vunpack.i.l.bf16 %v3716_v50 }
 0xb0e   :  { %v3604_v2 = vpack.c.bf16 %v3723_v51, %v3722_v5  ;;  %v3592_v54 = vpack.c.bf16 %v3718_v52, %v3717_v53 }
 0xb0f   :  { %v3726_v55 = vpop.permute.xlu0 %3725  ;;  %v1676_v56 = vpop.permute.xlu1 %1675 }
 0xb10   :  { %v3728_v3 = vunpack.i.h.bf16 %v3726_v55  ;;  %v3727_v57 = vunpack.i.l.bf16 %v3726_v55  ;;  %3594 = vmatprep.subr.msk.bf16.mxu1 %vm4095_vm3, %v3592_v54  ;;  %3409 = vmatprep.mubr.msk.bf16.mxu0 %vm189_vm2, %v1676_v56 }
 0xb11   :  { %3606 = vmatprep.subr.msk.bf16.mxu0 %vm4095_vm3, %v3604_v2  ;;  %3597 = vmatpush3.bf16.xpose.msk.msra.mxu1 %vm4095_vm3, %v3592_v54 }
 0xb12   :  { %v3598_v58 = vpack.c.bf16 %v3728_v3, %v3727_v57 }
 0xb13   :  { %v1738_v59 = vpop.permute.xlu0 %1737  ;;  %v1678_v6 = vpop.permute.xlu1 %1677 }
 0xb14   :  { %3600 = vmatprep.subr.msk.bf16.mxu1 %vm4095_vm3, %v3598_v58  ;;  %3410 = vmatmul.mubr.msk.bf16.vlgmr.msra.gmra.mrb[24].mxu0 %vm189_vm2, %v1678_v6 }
 0xb15   :  { %3609 = vmatpush3.bf16.xpose.msk.msra.mxu0 %vm4095_vm3, %v3604_v2  ;;  %3421 = vmatprep.mubr.msk.f32.mxu0 %vm189_vm2, %v1738_v59 }
 0xb17   :  { %v1742_v60 = vpop.permute.xlu0 %1741  ;;  %v3731_v62 = vpop.permute.xlu1 %3730 }
 0xb18   :  { %v3733_v0 = vunpack.i.h.bf16 %v3731_v62  ;;  %v3732_v4 = vunpack.i.l.bf16 %v3731_v62 }
 0xb19   :  { %3603 = vmatpush3.bf16.xpose.msk.msra.mxu1 %vm4095_vm3, %v3598_v58 }
 0xb1a   :  { %v3610_v8 = vpack.c.bf16 %v3733_v0, %v3732_v4  ;;  %3653 = vmatprep.subr.msk.bf16.mxu1 %vm303_vm1, %v1469_v63 }
 0xb1b   :  { %v3736_v9 = vpop.permute.xlu0 %3735  ;;  %v1740_v13 = vpop.permute.xlu1 %1739 }
 0xb1c   :  { %v3738_v23 = vunpack.i.h.bf16 %v3736_v9  ;;  %v3737_v15 = vunpack.i.l.bf16 %v3736_v9  ;;  %3612 = vmatprep.subr.msk.bf16.mxu0 %vm4095_vm3, %v3610_v8 }
 0xb1d   :  { %3615 = vmatpush3.bf16.xpose.msk.msra.mxu0 %vm4095_vm3, %v3610_v8 }
 0xb1e   :  { %3654 = vmatprep.subr.msk.bf16.mxu0 %vm303_vm1, %v1470_v14  ;;  %v3616_v19 = vpack.c.bf16 %v3738_v23, %v3737_v15 }
 0xb1f   :  { %v1855_v17 = vpop.permute.xlu0 %1854  ;;  %v1744_v18 = vpop.permute.xlu1 %1743 }
 0xb20   :  { %3402 = vmatmul.mubr.msk.f32.vlgmr.msra.gmra.mrb[32].mxu1 %vm189_vm2, %v4277_v38 }
 0xb21   :  { %3404 = vmatprep.mubr.msk.f32.mxu1 %vm189_vm2, %v4283_v45  ;;  %3428 = vmatpush3.bf16.msra.mxu1 %v1865_v16 }
 0xb22   :  { %3618 = vmatprep.subr.msk.bf16.mxu1 %vm4095_vm3, %v3616_v19 }
 0xb23   :  { %v2034_v22 = vpop.permute.xlu0 %2033  ;;  %v3741_v12 = vpop.permute.xlu1 %3740 }
 0xb24   :  { %v3743_v29 = vunpack.i.h.bf16 %v3741_v12  ;;  %v3742_v30 = vunpack.i.l.bf16 %v3741_v12  ;;  %3405 = vmatmul.mubr.msk.f32.gmra.mrb[34].mxu1 %vm189_vm2, %v4280_v36  ;;  %3422 = vmatmul.mubr.msk.f32.vlgmr.msra.gmra.mrb[28].mxu0 %vm189_vm2, %v1740_v13 }
 0xb25   :  { %3424 = vmatprep.mubr.msk.f32.mxu0 %vm189_vm2, %v1742_v60  ;;  %3429 = vmatprep.mubr.msk.bf16.mxu1 %vm189_vm2, %v1855_v17 }
 0xb26   :  { %v3628_v35 = vpack.c.bf16 %v3743_v29, %v3742_v30  ;;  %3448 = vmatpush3.bf16.msra.mxu0 %v2044_v28 }
 0xb27   :  { %v3746_v37 = vpop.permute.xlu0 %3745  ;;  %v1857_v39 = vpop.permute.xlu1 %1856 }
 0xb28   :  { %v3748_v40 = vunpack.i.h.bf16 %v3746_v37  ;;  %v3747_v41 = vunpack.i.l.bf16 %v3746_v37  ;;  %3425 = vmatmul.mubr.msk.f32.gmra.mrb[30].mxu0 %vm189_vm2, %v1744_v18  ;;  %3430 = vmatmul.mubr.msk.bf16.vlgmr.msra.gmra.mrb[36].mxu1 %vm189_vm2, %v1857_v39 }
 0xb29   :  { %3630 = vmatprep.subr.msk.bf16.mxu0 %vm4095_vm3, %v3628_v35  ;;  %3449 = vmatprep.mubr.msk.bf16.mxu0 %vm189_vm2, %v2034_v22 }
 0xb2a   :  { %v3622_v42 = vpack.c.bf16 %v3748_v40, %v3747_v41  ;;  %3621 = vmatpush3.bf16.xpose.msk.msra.mxu1 %vm4095_vm3, %v3616_v19 }
 0xb2b   :  { %v1917_v38 = vpop.permute.xlu0 %1916  ;;  %v2036_v36 = vpop.permute.xlu1 %2035 }
 0xb2c   :  { %3624 = vmatprep.subr.msk.bf16.mxu1 %vm4095_vm3, %v3622_v42  ;;  %3441 = vmatprep.mubr.msk.f32.mxu1 %vm189_vm2, %v1917_v38  ;;  %v1471_v38 = vld [vmem:[#allocation4 + $0xac] sm:$0xf] }
 0xb2d   :  { %3450 = vmatmul.mubr.msk.bf16.vlgmr.msra.gmra.mrb[32].mxu0 %vm189_vm2, %v2036_v36  ;;  %v2223_v36 = vsel %vm303_vm1, %v1471_v38, 0 }
 0xb2f   :  { %3633 = vmatpush3.bf16.xpose.msk.msra.mxu0 %vm4095_vm3, %v3628_v35  ;;  %v2096_v44 = vpop.permute.xlu0 %2095  ;;  %v3751_v45 = vpop.permute.xlu1 %3750 }
 0xb30   :  { %v3753_v46 = vunpack.i.h.bf16 %v3751_v45  ;;  %v3752_v49 = vunpack.i.l.bf16 %v3751_v45  ;;  %3461 = vmatprep.mubr.msk.f32.mxu0 %vm189_vm2, %v2096_v44 }
 0xb32   :  { %v3634_v50 = vpack.c.bf16 %v3753_v46, %v3752_v49  ;;  %3627 = vmatpush3.bf16.xpose.msk.msra.mxu1 %vm4095_vm3, %v3622_v42 }
 0xb33   :  { %v1919_v51 = vpop.permute.xlu1 %1918  ;;  %v1921_v52 = vpop.permute.xlu0 %1920  ;;  %3655 = vmatprep.subr.msk.bf16.mxu1 %vm303_vm1, %v1471_v38 }
 0xb34   :  { %3636 = vmatprep.subr.msk.bf16.mxu0 %vm4095_vm3, %v3634_v50 }
 0xb37   :  { %3639 = vmatpush3.bf16.xpose.msk.msra.mxu0 %vm4095_vm3, %v3634_v50  ;;  %v2098_v5 = vpop.permute.xlu1 %2097  ;;  %v2100_v2 = vpop.permute.xlu0 %2099 }
 0xb39   :  { %3442 = vmatmul.mubr.msk.f32.vlgmr.msra.gmra.mrb[40].mxu1 %vm189_vm2, %v1919_v51 }
 0xb3a   :  { %3444 = vmatprep.mubr.msk.f32.mxu1 %vm189_vm2, %v1921_v52  ;;  %3468 = vmatpush3.bf16.msra.mxu1 %v2223_v36 }
 0xb3b   :  { %v1923_v53 = vpop.permute.xlu1 %1922  ;;  %3473 = vmatprep.subr.bf16.mxu1 %v4199_v43 }
 0xb3d   :  { %3445 = vmatmul.mubr.msk.f32.gmra.mrb[42].mxu1 %vm189_vm2, %v1923_v53 }
 0xb3e   :  { %3462 = vmatmul.mubr.msk.f32.vlgmr.msra.gmra.mrb[36].mxu0 %vm189_vm2, %v2098_v5 }
 0xb3f   :  { %3464 = vmatprep.mubr.msk.f32.mxu0 %vm189_vm2, %v2100_v2  ;;  %v2102_v54 = vpop.permute.xlu1 %2101 }
 0xb42   :  { %3465 = vmatmul.mubr.msk.f32.gmra.mrb[38].mxu0 %vm189_vm2, %v2102_v54 }
 0xbe7   :  { %v3411_v55 = vpop.f32.mrb[24].mxu0 }
 0xbe8   :  { %v1722_v31 = vpop.f32.mrb[25].mxu0 }
 0xbe9   :  { %v3412_v56 = vpop.f32.mrb[26].mxu0 }
 0xbea   :  { %v2420_v3 = vpack.c.bf16 %v3412_v56, %v3411_v55  ;;  %v1725_v57 = vpop.f32.mrb[27].mxu0 }
 0xbeb   :  { %v2419_v58 = vpack.c.bf16 %v1725_v57, %v1722_v31  ;;  %v3851_v31 = vld [vmem:[#allocation6 + $0x8] sm:$0xff] }
 0xbed   :  { %3493 = vmatprep.subr.bf16.mxu0 %v2419_v58 }
 0xbee   :  { %3494 = vmatpush3.bf16.msra.mxu0 %v2419_v58 }
 0xbef   :  { %3495 = vmatprep.subr.bf16.mxu0 %v2420_v3 }
 0xbf2   :  { %3496 = vmatpush3.bf16.msra.mxu0 %v2420_v3  ;;  %v3852_v3 = vld [vmem:[#allocation6] sm:$0xff] }
 0xbf3   :  { %v3403_v59 = vpop.f32.mrb[32].mxu1 }
 0xbf4   :  { %v1654_v6 = vpop.f32.mrb[33].mxu1 }
 0xbf7   :  { %v4395_v60 = vpop.f32.mrb[34].mxu1  ;;  %v3423_v62 = vpop.f32.mrb[28].mxu0 }
 0xbf8   :  { %v4397_v63 = vpop.f32.mrb[35].mxu1  ;;  %2280 = vrot.lane.b32.xlu1 %v3423_v62, %s3949_s5  ;;  %v1835_v0 = vpop.f32.mrb[29].mxu0 }
 0xbf9   :  { %2278 = vrot.lane.b32.xlu0 %v1835_v0, %s3949_s5 }
 0xbfb   :  { %v3426_v4 = vpop.f32.mrb[30].mxu0  ;;  %v3431_v8 = vpop.f32.mrb[36].mxu1 }
 0xbfc   :  { %v1901_v9 = vpop.f32.mrb[37].mxu1  ;;  %2284 = vrot.lane.b32.xlu1 %v3426_v4, %s3949_s5  ;;  %v1845_v13 = vpop.f32.mrb[31].mxu0 }
 0xbfd   :  { %v3432_v14 = vpop.f32.mrb[38].mxu1  ;;  %2282 = vrot.lane.b32.xlu0 %v1845_v13, %s3949_s5 }
 0xbfe   :  { %v2422_v23 = vpack.c.bf16 %v3432_v14, %v3431_v8  ;;  %v1904_v15 = vpop.f32.mrb[39].mxu1  ;;  %v3853_v14 = vld [vmem:[#allocation6 + $0x10] sm:$0xff] }
 0xbff   :  { %v2421_v16 = vpack.c.bf16 %v1904_v15, %v1901_v9 }
 0xc00   :  { %v3451_v17 = vpop.f32.mrb[32].mxu0 }
 0xc01   :  { %v2080_v18 = vpop.f32.mrb[33].mxu0  ;;  %3497 = vmatprep.subr.bf16.mxu0 %v2421_v16 }
 0xc02   :  { %v3452_v19 = vpop.f32.mrb[34].mxu0  ;;  %3498 = vmatpush3.bf16.msra.mxu0 %v2421_v16 }
 0xc03   :  { %v2424_v22 = vpack.c.bf16 %v3452_v19, %v3451_v17  ;;  %v2083_v12 = vpop.f32.mrb[35].mxu0  ;;  %3499 = vmatprep.subr.bf16.mxu0 %v2422_v23 }
 0xc04   :  { %v2423_v28 = vpack.c.bf16 %v2083_v12, %v2080_v18 }
 0xc06   :  { %3500 = vmatpush3.bf16.msra.mxu0 %v2422_v23 }
 0xc07   :  { %3501 = vmatprep.subr.bf16.mxu0 %v2423_v28 }
 0xc0a   :  { %3502 = vmatpush3.bf16.msra.mxu0 %v2423_v28 }
 0xc0b   :  { %3503 = vmatprep.subr.bf16.mxu0 %v2424_v22 }
 0xc0c   :  { %v3443_v29 = vpop.f32.mrb[40].mxu1 }
 0xc0d   :  { %v2014_v30 = vpop.f32.mrb[41].mxu1  ;;  %2296 = vrot.lane.b32.xlu1 %v3443_v29, %s3934_s22 }
 0xc0e   :  { %2294 = vrot.lane.b32.xlu0 %v2014_v30, %s3934_s22  ;;  %3504 = vmatpush3.bf16.msra.mxu0 %v2424_v22  ;;  %v3855_v30 = vld [vmem:[#allocation4] sm:$0xff]  }
 0xc10   :  { %v3446_v35 = vpop.f32.mrb[42].mxu1 }
 0xc11   :  { %v3463_v37 = vpop.f32.mrb[36].mxu0  ;;  %v2024_v39 = vpop.f32.mrb[43].mxu1 }
 0xc12   :  { %2312 = vrot.lane.b32.xlu1 %v3463_v37, %s3940_s2  ;;  %v2193_v40 = vpop.f32.mrb[37].mxu0 }
 0xc13   :  { %2310 = vrot.lane.b32.xlu0 %v2193_v40, %s3940_s2 }
 0xc15   :  { %v3466_v41 = vpop.f32.mrb[38].mxu0 }
 0xc16   :  { %2300 = vrot.lane.b32.xlu1 %v3446_v35, %s3934_s22  ;;  %v2203_v42 = vpop.f32.mrb[39].mxu0  ;;  %v3856_v35 = vld [vmem:[#allocation4 + $0x8] sm:$0xff]  }
 0xc17   :  { %2298 = vrot.lane.b32.xlu0 %v2024_v39, %s3934_s22  ;;  %v3857_v39 = vld [vmem:[#allocation4 + $0x10] sm:$0xff]  }
 0xc1a   :  { %2316 = vrot.lane.b32.xlu1 %v3466_v41, %s3940_s2 }
 0xc1b   :  { %2314 = vrot.lane.b32.xlu0 %v2203_v42, %s3940_s2  ;;  %v3858_v42 = vld [vmem:[#allocation4 + $0x18] sm:$0xff]  }
 0xc1f   :  { %2212 = vrot.lane.b32.xlu0 %v4290_v47, %s3950_s6 }
 0xc6a   :  { %v2281_v44 = vpop.permute.xlu1 %2280 }
 0xc6b   :  { %v2279_v45 = vpop.permute.xlu0 %2278  ;;  %v2323_v5 = vsel %vm119_vm0, %v3403_v59, %v2281_v44 }
 0xc6c   :  { %v2322_v52 = vsel %vm119_vm0, %v1654_v6, %v2279_v45 }
 0xc6e   :  { %v2285_v46 = vpop.permute.xlu1 %2284 }
 0xc6f   :  { %v2283_v49 = vpop.permute.xlu0 %2282  ;;  %v2325_v8 = vsel %vm119_vm0, %v4395_v60, %v2285_v46  ;;  %v3859_v46 = vld [vmem:[#allocation4 + $0x20] sm:$0xff]  }
 0xc70   :  { %v2324_v59 = vsel %vm119_vm0, %v4397_v63, %v2283_v49  ;;  %v3854_v63 = vld [vmem:[#allocation6 + $0x18] sm:$0xff] }
 0xc7f   :  { %v2297_v50 = vpop.permute.xlu1 %2296 }
 0xc80   :  { %v2295_v51 = vpop.permute.xlu0 %2294  ;;  %v2327_v53 = vsel %vm945_vm4, %v2323_v5, %v2297_v50  ;;  %v3860_v50 = vld [vmem:[#allocation4 + $0x28] sm:$0xff]   ;;  %v3862_v5 = vld [vmem:[#allocation4 + $0x38] sm:$0xff]  }
 0xc81   :  { %v2326_v2 = vsel %vm945_vm4, %v2322_v52, %v2295_v51  ;;  %v3861_v51 = vld [vmem:[#allocation4 + $0x30] sm:$0xff]  }
 0xc84   :  { %v2313_v47 = vpop.permute.xlu1 %2312 }
 0xc85   :  { %v2331_v54 = vsel %vm950_vm5, %v2327_v53, %v2313_v47  ;;  %v2311_v55 = vpop.permute.xlu0 %2310 }
 0xc86   :  { %v2330_v43 = vsel %vm950_vm5, %v2326_v2, %v2311_v55  ;;  %v2335_v56 = vadd.f32 %v3851_v31, %v2331_v54 }
 0xc87   :  { %v2334_v57 = vadd.f32 %v3852_v3, %v2330_v43 }
 0xc88   :  { %v2301_v58 = vpop.permute.xlu1 %2300  ;;  %2340 = vmax.xlane.f32.xlu0 %v2335_v56 }
 0xc89   :  { %v2299_v62 = vpop.permute.xlu0 %2298  ;;  %2338 = vmax.xlane.f32.xlu1 %v2334_v57  ;;  %v2329_v13 = vsel %vm945_vm4, %v2325_v8, %v2301_v58 }
 0xc8a   :  { %v2328_v6 = vsel %vm945_vm4, %v2324_v59, %v2299_v62 }
 0xc8c   :  { %v2317_v0 = vpop.permute.xlu1 %2316 }
 0xc8d   :  { %v2315_v4 = vpop.permute.xlu0 %2314  ;;  %v2333_v15 = vsel %vm950_vm5, %v2329_v13, %v2317_v0 }
 0xc8e   :  { %v2332_v9 = vsel %vm950_vm5, %v2328_v6, %v2315_v4  ;;  %v2337_v17 = vadd.f32 %v3854_v63, %v2333_v15 }
 0xc8f   :  { %v2336_v23 = vadd.f32 %v3853_v14, %v2332_v9 }
 0xc91   :  { %2342 = vmax.xlane.f32.xlu1 %v2336_v23  ;;  %v2213_v16 = vpop.permute.xlu0 %2212 }
 0xc92   :  { %3469 = vmatprep.mubr.msk.bf16.mxu1 %vm189_vm2, %v2213_v16  ;;  %v2479_v16 = vrot.slane %v4273_v32, %v4207_v33 }
 0xc95   :  { %2344 = vmax.xlane.f32.xlu1 %v2337_v17 }
 0xc9e   :  { %2214 = vrot.lane.b32.xlu0 %v4297_v48, %s3950_s6 }
 0xd15   :  { %v2341_v18 = vpop.xlane.xlu0 %2340 }
 0xd16   :  { %v2347_v60 = vsub.f32 %v2335_v56, %v2341_v18  ;;  %v2339_v19 = vpop.xlane.xlu1 %2338 }
 0xd17   :  { %v2346_v22 = vsub.f32 %v2334_v57, %v2339_v19 }
 0xd18   :  { %v2352_v12 = vmul.f32 1.442695, %v2347_v60 }
 0xd19   :  { %v2350_v28 = vmul.f32 1.442695, %v2346_v22  ;;  %v2215_v29 = vpop.permute.xlu0 %2214 }
 0xd1a   :  { %3810 = vpow2.f32 %v2352_v12  ;;  %3470 = vmatmul.mubr.msk.bf16.vlgmr.msra.gmra.mrb[44].mxu1 %vm189_vm2, %v2215_v29 }
 0xd1b   :  { %3812 = vpow2.f32 %v2350_v28  ;;  %3474 = vmatpush3.bf16.msra.mxu1 %v3855_v30 }
 0xd1c   :  { %3475 = vmatprep.subr.bf16.mxu1 %v3856_v35 }
 0xd1e   :  { %v2343_v37 = vpop.xlane.xlu1 %2342 }
 0xd1f   :  { %3476 = vmatpush3.bf16.msra.mxu1 %v3856_v35  ;;  %v2348_v36 = vsub.f32 %v2336_v23, %v2343_v37 }
 0xd20   :  { %3477 = vmatprep.subr.bf16.mxu1 %v3857_v39 }
 0xd21   :  { %v2354_v49 = vmul.f32 1.442695, %v2348_v36 }
 0xd22   :  { %v2345_v48 = vpop.xlane.xlu1 %2344 }
 0xd23   :  { %v2349_v40 = vsub.f32 %v2337_v17, %v2345_v48  ;;  %3478 = vmatpush3.bf16.msra.mxu1 %v3857_v39 }
 0xd24   :  { %v3811_v41 = vpop.eup %3810  ;;  %3479 = vmatprep.subr.bf16.mxu1 %v3858_v42 }
 0xd25   :  { %v3813_v38 = vpop.eup %3812  ;;  %v2356_v45 = vmul.f32 1.442695, %v2349_v40 }
 0xd26   :  { %v2358_v44 = vpack.c.bf16 %v3811_v41, %v3813_v38 }
 0xd27   :  { %3480 = vmatpush3.bf16.msra.mxu1 %v3858_v42  ;;  %3814 = vpow2.f32 %v2356_v45 }
 0xd28   :  { %3489 = vmatprep.mubr.bf16.mxu1 %v2358_v44  ;;  %3481 = vmatprep.subr.bf16.mxu1 %v3859_v46  ;;  %3816 = vpow2.f32 %v2354_v49 }
 0xd2b   :  { %3482 = vmatpush3.bf16.msra.mxu1 %v3859_v46 }
 0xd2c   :  { %3483 = vmatprep.subr.bf16.mxu1 %v3860_v50 }
 0xd2f   :  { %3484 = vmatpush3.bf16.msra.mxu1 %v3860_v50 }
 0xd30   :  { %3485 = vmatprep.subr.bf16.mxu1 %v3861_v51 }
 0xd31   :  { %v3815_v52 = vpop.eup %3814 }
 0xd32   :  { %v3817_v53 = vpop.eup %3816 }
 0xd33   :  { %3486 = vmatpush3.bf16.msra.mxu1 %v3861_v51  ;;  %v2359_v47 = vpack.c.bf16 %v3815_v52, %v3817_v53 }
 0xd34   :  { %3487 = vmatprep.subr.bf16.mxu1 %v3862_v5 }
 0xd37   :  { %3488 = vmatpush3.bf16.msra.mxu1 %v3862_v5 }
 0xd3a   :  { %3490 = vmatmul.mubr.bf16.vlgmr.msra.gmra.mrb[48].mxu1 %v2359_v47 }
 0xded   :  { %v3471_v2 = vpop.f32.mrb[44].mxu1 }
 0xdee   :  { %v2259_v54 = vpop.f32.mrb[45].mxu1 }
 0xdef   :  { %v3472_v55 = vpop.f32.mrb[46].mxu1 }
 0xdf0   :  { %v2426_v43 = vpack.c.bf16 %v3472_v55, %v3471_v2  ;;  %v2262_v31 = vpop.f32.mrb[47].mxu1 }
 0xdf1   :  { %v2425_v56 = vpack.c.bf16 %v2262_v31, %v2259_v54  ;;  %v3773_v31 = vld [vmem:[#allocation4 + $0xb8] sm:$0xff]  }
 0xdf3   :  { %3505 = vmatprep.subr.bf16.mxu0 %v2425_v56 }
 0xdf4   :  { %3506 = vmatpush3.bf16.msra.mxu0 %v2425_v56  ;;  %v3774_v56 = vld [vmem:[#allocation4 + $0xc0] sm:$0xff]  }
 0xdf5   :  { %3507 = vmatprep.subr.bf16.mxu0 %v2426_v43 }
 0xdf8   :  { %3508 = vmatpush3.bf16.msra.mxu0 %v2426_v43  ;;  %v3772_v43 = vld [vmem:[#allocation4 + $0xb0] sm:$0xff]  }
 0xdf9   :  { %3513 = vmatprep.subr.bf16.mxu1 %v3772_v43  ;;  %3521 = vmatprep.subr.bf16.mxu0 %v3774_v56 }
 0xdfa   :  { %3514 = vmatpush3.bf16.msra.mxu1 %v3772_v43 }
 0xdfb   :  { %3515 = vmatprep.subr.bf16.mxu1 %v3773_v31 }
 0xdfe   :  { %3516 = vmatpush3.bf16.msra.mxu1 %v3773_v31 }
 0xe0d   :  { %v3491_v3 = vpop.f32.mrb[48].mxu1 }
 0xe0e   :  { %3818 = vrcp.f32 %v3491_v3  ;;  %v2394_v57 = vpop.f32.mrb[49].mxu1  ;;  %v3775_v3 = vld [vmem:[#allocation4 + $0xc8] sm:$0xff]  }
 0xe0f   :  { %3820 = vrcp.f32 %v2394_v57  ;;  %v3492_v58 = vpop.f32.mrb[50].mxu1 }
 0xe10   :  { %3822 = vrcp.f32 %v3492_v58  ;;  %v2397_v62 = vpop.f32.mrb[51].mxu1 }
 0xe11   :  { %3824 = vrcp.f32 %v2397_v62 }
 0xe18   :  { %v3819_v59 = vpop.eup %3818 }
 0xe19   :  { %v3821_v6 = vpop.eup %3820  ;;  %v2415_v8 = vmul.f32 %v3819_v59, %v3817_v53 }
 0xe1a   :  { %v3823_v0 = vpop.eup %3822  ;;  %v2413_v13 = vmul.f32 %v3821_v6, %v3813_v38 }
 0xe1b   :  { %v3825_v4 = vpop.eup %3824  ;;  %v2416_v9 = vmul.f32 %v3823_v0, %v3815_v52 }
 0xe1c   :  { %v2414_v14 = vmul.f32 %v3825_v4, %v3811_v41 }
 0xe1d   :  { %v2418_v23 = vpack.c.bf16 %v2416_v9, %v2415_v8 }
 0xe1e   :  { %v2417_v15 = vpack.c.bf16 %v2414_v14, %v2413_v13 }
 0xe20   :  { %3509 = vmatprep.mubr.bf16.mxu0 %v2417_v15 }
 0xe21   :  { %3510 = vmatmul.mubr.bf16.vlgmr.msra.gmra.mrb[40].mxu0 %v2418_v23 }
 0xe22   :  { %3522 = vmatpush3.bf16.msra.mxu0 %v3774_v56 }
 0xe23   :  { %3523 = vmatprep.subr.bf16.mxu0 %v3775_v3 }
 0xe26   :  { %3524 = vmatpush3.bf16.msra.mxu0 %v3775_v3 }
 0xef4   :  { %v3511_v63 = vpop.f32.mrb[40].mxu0 }
 0xef5   :  { %v2461_v17 = vpop.f32.mrb[41].mxu0  ;;  %v2482_v30 = vadd.f32 %v3511_v63, %v2479_v16 }
 0xef6   :  { %v2480_v18 = vadd.f32 %v2479_v16, %v2461_v17  ;;  %v3512_v60 = vpop.f32.mrb[42].mxu0  ;;  %v2543_v17 = vrot.slane %v4273_v32, %v1212_v27 }
 0xef7   :  { %v2483_v19 = vadd.f32 %v3512_v60, %v2479_v16  ;;  %v2464_v22 = vpop.f32.mrb[43].mxu0  ;;  %v2486_v48 = vadd.f32 %v2482_v30, %v4263_v24 }
 0xef8   :  { %v2484_v12 = vadd.f32 %v2480_v18, %v4257_v20  ;;  %v2481_v28 = vadd.f32 %v2479_v16, %v2464_v22 }
 0xef9   :  { %v2487_v29 = vadd.f32 %v2483_v19, %v4265_v26  ;;  %v2494_v41 = vsel %vm119_vm0, %v2486_v48, 0.0 }
 0xefa   :  { %v2485_v35 = vadd.f32 %v2481_v28, %v4259_v21  ;;  %v2488_v37 = vsel %vm119_vm0, %v2484_v12, 0.0  ;;  %v2551_v28 = vrot.slane %v4273_v32, %v1220_v34  ;;  %v2561_v34 = vrot.slane %v4273_v32, %v1230_v25 }
 0xefb   :  { %2489 = vadd.xlane.f32.xlu1 %v2488_v37  ;;  %v2497_v39 = vsel %vm119_vm0, %v2487_v29, 0.0  ;;  %v2717_v25 = vrot.slane %v4273_v32, %v1386_v1 }
 0xefc   :  { %2498 = vadd.xlane.f32.xlu0 %v2497_v39  ;;  %v2491_v40 = vsel %vm119_vm0, %v2485_v35, 0.0 }
 0xeff   :  { %2492 = vadd.xlane.f32.xlu1 %v2491_v40 }
 0xf03   :  { %2495 = vadd.xlane.f32.xlu1 %v2494_v41 }
 0xf88   :  { %v2490_v20 = vpop.xlane.xlu1 %2489 }
 0xf89   :  { %v2500_v26 = vmul.f32 0.03125, %v2490_v20  ;;  %v2499_v46 = vpop.xlane.xlu0 %2498 }
 0xf8a   :  { %v2503_v50 = vmul.f32 0.03125, %v2499_v46 }
 0xf8b   :  { %v2504_v21 = vsub.f32 %v2484_v12, %v2500_v26  ;;  %v3777_v26 = vld [vmem:[#allocation4 + $0xd8] sm:$0xff]  }
 0xf8c   :  { %v2493_v42 = vpop.xlane.xlu1 %2492  ;;  %v2507_v52 = vsub.f32 %v2487_v29, %v2503_v50 }
 0xf8d   :  { %v2501_v44 = vmul.f32 0.03125, %v2493_v42  ;;  %v2508_v5 = vmul.f32 %v2504_v21, %v2504_v21  ;;  %v3776_v42 = vld [vmem:[#allocation4 + $0xd0] sm:$0xff]  }
 0xf8e   :  { %v2511_v54 = vmul.f32 %v2507_v52, %v2507_v52  ;;  %3525 = vmatprep.subr.bf16.mxu0 %v3776_v42 }
 0xf8f   :  { %v2505_v51 = vsub.f32 %v2485_v35, %v2501_v44  ;;  %v2512_v53 = vsel %vm119_vm0, %v2508_v5, 0.0  ;;  %3526 = vmatpush3.bf16.msra.mxu0 %v3776_v42 }
 0xf90   :  { %v2496_v38 = vpop.xlane.xlu1 %2495  ;;  %v2521_v55 = vsel %vm119_vm0, %v2511_v54, 0.0  ;;  %3527 = vmatprep.subr.bf16.mxu0 %v3777_v26 }
 0xf91   :  { %v2502_v36 = vmul.f32 0.03125, %v2496_v38  ;;  %v2509_v47 = vmul.f32 %v2505_v51, %v2505_v51 }
 0xf93   :  { %v2506_v45 = vsub.f32 %v2486_v48, %v2502_v36  ;;  %v2515_v2 = vsel %vm119_vm0, %v2509_v47, 0.0  ;;  %3528 = vmatpush3.bf16.msra.mxu0 %v3777_v26 }
 0xf95   :  { %v2510_v49 = vmul.f32 %v2506_v45, %v2506_v45 }
 0xf97   :  { %v2518_v24 = vsel %vm119_vm0, %v2510_v49, 0.0 }
 0xf98   :  { %2519 = vadd.xlane.f32.xlu1 %v2518_v24 }
 0xf9c   :  { %2513 = vadd.xlane.f32.xlu1 %v2512_v53 }
 0xfa0   :  { %2516 = vadd.xlane.f32.xlu1 %v2515_v2 }
 0xfa4   :  { %2522 = vadd.xlane.f32.xlu1 %v2521_v55 }
0x1025   :  { %v2520_v57 = vpop.xlane.xlu1 %2519 }
0x1026   :  { %v2526_v58 = vmul.f32 0.03125, %v2520_v57 }
0x1028   :  { %v2530_v6 = vadd.f32 1e-05, %v2526_v58 }
0x1029   :  { %v2514_v62 = vpop.xlane.xlu1 %2513 }
0x102a   :  { %v2524_v59 = vmul.f32 0.03125, %v2514_v62 }
0x102c   :  { %v2528_v0 = vadd.f32 1e-05, %v2524_v59 }
0x102d   :  { %v2517_v4 = vpop.xlane.xlu1 %2516 }
0x102e   :  { %3826 = vrsqrt.f32 %v2528_v0  ;;  %v2525_v8 = vmul.f32 0.03125, %v2517_v4 }
0x102f   :  { %3828 = vrsqrt.f32 %v2530_v6 }
0x1030   :  { %v2529_v9 = vadd.f32 1e-05, %v2525_v8 }
0x1031   :  { %v2523_v13 = vpop.xlane.xlu1 %2522 }
0x1032   :  { %3830 = vrsqrt.f32 %v2529_v9  ;;  %v2527_v14 = vmul.f32 0.03125, %v2523_v13 }
0x1034   :  { %v2531_v23 = vadd.f32 1e-05, %v2527_v14 }
0x1036   :  { %3832 = vrsqrt.f32 %v2531_v23 }
0x1038   :  { %v3827_v15 = vpop.eup %3826 }
0x1039   :  { %v2536_v16 = vmul.f32 %v3827_v15, %v2504_v21  ;;  %v3829_v63 = vpop.eup %3828 }
0x103a   :  { %v2538_v60 = vmul.f32 %v3829_v63, %v2506_v45 }
0x103b   :  { %v2544_v22 = vmul.f32 %v2543_v17, %v2536_v16 }
0x103c   :  { %v3831_v18 = vpop.eup %3830  ;;  %v2546_v30 = vmul.f32 %v2543_v17, %v2538_v60 }
0x103d   :  { %v2537_v19 = vmul.f32 %v3831_v18, %v2505_v51  ;;  %v2552_v37 = vadd.f32 %v2551_v28, %v2544_v22 }
0x103e   :  { %v2554_v41 = vadd.f32 %v2551_v28, %v2546_v30 }
0x103f   :  { %v2545_v12 = vmul.f32 %v2543_v17, %v2537_v19 }
0x1040   :  { %v3833_v29 = vpop.eup %3832 }
0x1041   :  { %v2539_v35 = vmul.f32 %v3833_v29, %v2507_v52  ;;  %v2553_v39 = vadd.f32 %v2551_v28, %v2545_v12 }
0x1043   :  { %v2547_v48 = vmul.f32 %v2543_v17, %v2539_v35  ;;  %v2556_v40 = vpack.c.bf16 %v2553_v39, %v2552_v37 }
0x1045   :  { %3517 = vmatprep.mubr.msk.bf16.mxu1 %vm119_vm0, %v2556_v40  ;;  %v2555_v27 = vadd.f32 %v2551_v28, %v2547_v48 }
0x1047   :  { %v2557_v20 = vpack.c.bf16 %v2555_v27, %v2554_v41 }
0x1049   :  { %3518 = vmatmul.mubr.msk.bf16.vlgmr.msra.gmra.mrb[52].mxu1 %vm119_vm0, %v2557_v20 }
0x111c   :  { %v3519_v38 = vpop.f32.mrb[52].mxu1 }
0x111d   :  { %v2623_v36 = vadd.f32 %v3519_v38, %v2561_v34  ;;  %v2614_v21 = vpop.f32.mrb[53].mxu1 }
0x111e   :  { %v2615_v44 = vadd.f32 %v2614_v21, %v2561_v34  ;;  %v3520_v45 = vpop.f32.mrb[54].mxu1 }
0x111f   :  { %v2626_v46 = vadd.f32 %v3520_v45, %v2561_v34  ;;  %v2617_v49 = vpop.f32.mrb[55].mxu1  ;;  %v2631_v51 = vmax.f32 %v2623_v36, 0.0 }
0x1120   :  { %v2618_v50 = vadd.f32 %v2617_v49, %v2561_v34  ;;  %v2629_v5 = vmax.f32 %v2615_v44, 0.0 }
0x1121   :  { %v2632_v24 = vmax.f32 %v2626_v46, 0.0  ;;  %v2781_v46 = vrot.slane %v4273_v32, %v1450_v61 }
0x1122   :  { %v2630_v52 = vmax.f32 %v2618_v50, 0.0 }
0x1123   :  { %v2634_v53 = vpack.c.bf16 %v2632_v24, %v2631_v51  ;;  %v2789_v51 = vrot.slane %v4273_v32, %v1458_v7 }
0x1124   :  { %v2633_v47 = vpack.c.bf16 %v2630_v52, %v2629_v5 }
0x1126   :  { %3529 = vmatprep.mubr.msk.bf16.mxu0 %vm945_vm4, %v2633_v47 }
0x1127   :  { %3530 = vmatmul.mubr.msk.bf16.vlgmr.msra.gmra.mrb[44].mxu0 %vm945_vm4, %v2634_v53 }
0x11fa   :  { %v3531_v2 = vpop.f32.mrb[44].mxu0 }
0x11fb   :  { %v2720_v54 = vadd.f32 %v3531_v2, %v2717_v25  ;;  %v2699_v55 = vpop.f32.mrb[45].mxu0 }
0x11fc   :  { %v2718_v43 = vadd.f32 %v2717_v25, %v2699_v55  ;;  %v3532_v31 = vpop.f32.mrb[46].mxu0 }
0x11fd   :  { %v2724_v56 = vadd.f32 %v2720_v54, %v2554_v41  ;;  %v2702_v3 = vpop.f32.mrb[47].mxu0  ;;  %v2721_v59 = vadd.f32 %v3532_v31, %v2717_v25 }
0x11fe   :  { %v2722_v57 = vadd.f32 %v2718_v43, %v2552_v37  ;;  %v2719_v58 = vadd.f32 %v2717_v25, %v2702_v3 }
0x11ff   :  { %v2732_v62 = vsel %vm119_vm0, %v2724_v56, 0.0  ;;  %v2725_v4 = vadd.f32 %v2721_v59, %v2555_v27 }
0x1200   :  { %2733 = vadd.xlane.f32.xlu1 %v2732_v62  ;;  %v2723_v6 = vadd.f32 %v2719_v58, %v2553_v39  ;;  %v2726_v0 = vsel %vm119_vm0, %v2722_v57, 0.0 }
0x1201   :  { %v2735_v8 = vsel %vm119_vm0, %v2725_v4, 0.0 }
0x1202   :  { %v2729_v1 = vsel %vm119_vm0, %v2723_v6, 0.0 }
0x1204   :  { %2727 = vadd.xlane.f32.xlu1 %v2726_v0 }
0x1208   :  { %2730 = vadd.xlane.f32.xlu1 %v2729_v1 }
0x120c   :  { %2736 = vadd.xlane.f32.xlu1 %v2735_v8 }
0x128d   :  { %v2734_v9 = vpop.xlane.xlu1 %2733 }
0x128e   :  { %v2740_v13 = vmul.f32 0.03125, %v2734_v9 }
0x1290   :  { %v2744_v15 = vsub.f32 %v2724_v56, %v2740_v13 }
0x1291   :  { %v2728_v14 = vpop.xlane.xlu1 %2727 }
0x1292   :  { %v2738_v23 = vmul.f32 0.03125, %v2728_v14  ;;  %v2748_v22 = vmul.f32 %v2744_v15, %v2744_v15 }
0x1294   :  { %v2742_v16 = vsub.f32 %v2722_v57, %v2738_v23  ;;  %v2756_v35 = vsel %vm119_vm0, %v2748_v22, 0.0 }
0x1295   :  { %v2731_v63 = vpop.xlane.xlu1 %2730 }
0x1296   :  { %v2739_v17 = vmul.f32 0.03125, %v2731_v63  ;;  %v2746_v18 = vmul.f32 %v2742_v16, %v2742_v16 }
0x1298   :  { %v2743_v60 = vsub.f32 %v2723_v6, %v2739_v17  ;;  %v2750_v19 = vsel %vm119_vm0, %v2746_v18, 0.0 }
0x1299   :  { %2751 = vadd.xlane.f32.xlu0 %v2750_v19  ;;  %v2737_v12 = vpop.xlane.xlu1 %2736 }
0x129a   :  { %v2741_v28 = vmul.f32 0.03125, %v2737_v12  ;;  %v2747_v29 = vmul.f32 %v2743_v60, %v2743_v60  ;;  %v2797_v12 = vld [vmem:[#allocation6 + $0x3e] sm:$0xff] }
0x129b   :  { %3541 = vmatprep.mubr.msk.f32.mxu0 %vm119_vm0, %v2797_v12 }
0x129c   :  { %v2745_v30 = vsub.f32 %v2725_v4, %v2741_v28  ;;  %v2753_v37 = vsel %vm119_vm0, %v2747_v29, 0.0 }
0x129d   :  { %2757 = vadd.xlane.f32.xlu0 %v2756_v35  ;;  %2754 = vadd.xlane.f32.xlu1 %v2753_v37 }
0x129e   :  { %v2749_v39 = vmul.f32 %v2745_v30, %v2745_v30 }
0x12a0   :  { %v2759_v48 = vsel %vm119_vm0, %v2749_v39, 0.0 }
0x12a1   :  { %2760 = vadd.xlane.f32.xlu1 %v2759_v48 }
0x1326   :  { %v2752_v40 = vpop.xlane.xlu0 %2751 }
0x1327   :  { %v2762_v41 = vmul.f32 0.03125, %v2752_v40 }
0x1329   :  { %v2766_v27 = vadd.f32 1e-05, %v2762_v41 }
0x132a   :  { %v2758_v20 = vpop.xlane.xlu0 %2757  ;;  %v2755_v42 = vpop.xlane.xlu1 %2754 }
0x132b   :  { %3834 = vrsqrt.f32 %v2766_v27  ;;  %v2764_v26 = vmul.f32 0.03125, %v2758_v20  ;;  %v2763_v34 = vmul.f32 0.03125, %v2755_v42 }
0x132d   :  { %v2768_v38 = vadd.f32 1e-05, %v2764_v26  ;;  %v2767_v36 = vadd.f32 1e-05, %v2763_v34  ;;  %v2794_v26 = vld [vmem:[#allocation6 + $0x30] sm:$0x3] }
0x132e   :  { %v2761_v21 = vpop.xlane.xlu1 %2760 }
0x132f   :  { %3836 = vrsqrt.f32 %v2768_v38  ;;  %v2765_v44 = vmul.f32 0.03125, %v2761_v21 }
0x1330   :  { %3838 = vrsqrt.f32 %v2767_v36  ;;  %v2854_v36 = vrot.slane %v2794_v26, %v4027_v11 }
0x1331   :  { %v2769_v45 = vadd.f32 1e-05, %v2765_v44 }
0x1333   :  { %3840 = vrsqrt.f32 %v2769_v45 }
0x1335   :  { %v3835_v49 = vpop.eup %3834 }
0x1336   :  { %v2774_v50 = vmul.f32 %v3835_v49, %v2742_v16  ;;  %v2862_v49 = vrot.slane %v2794_v26, %v4207_v33  ;;  %v2796_v33 = vld [vmem:[#allocation6 + $0x3a] sm:$0xf] }
0x1338   :  { %v2782_v24 = vmul.f32 %v2781_v46, %v2774_v50 }
0x1339   :  { %v3837_v5 = vpop.eup %3836 }
0x133a   :  { %v3839_v52 = vpop.eup %3838  ;;  %v2790_v53 = vadd.f32 %v2789_v51, %v2782_v24  ;;  %v2776_v47 = vmul.f32 %v3837_v5, %v2744_v15 }
0x133b   :  { %v2775_v25 = vmul.f32 %v3839_v52, %v2743_v60 }
0x133c   :  { %v2799_v2 = vsel %vm119_vm0, %v2790_v53, 0.0  ;;  %v2784_v54 = vmul.f32 %v2781_v46, %v2776_v47 }
0x133d   :  { %v3841_v55 = vpop.eup %3840  ;;  %2800 = vadd.xlane.f32.xlu0 %v2799_v2  ;;  %v2783_v43 = vmul.f32 %v2781_v46, %v2775_v25 }
0x133e   :  { %v2792_v31 = vadd.f32 %v2789_v51, %v2784_v54  ;;  %v2777_v61 = vmul.f32 %v3841_v55, %v2745_v30 }
0x133f   :  { %v2791_v56 = vadd.f32 %v2789_v51, %v2783_v43  ;;  %v2798_v43 = vld [vmem:[#allocation6 + $0x46] sm:$0xf] }
0x1340   :  { %v2805_v3 = vsel %vm119_vm0, %v2792_v31, 0.0  ;;  %v2785_v10 = vmul.f32 %v2781_v46, %v2777_v61 }
0x1341   :  { %2806 = vadd.xlane.f32.xlu0 %v2805_v3  ;;  %v2802_v7 = vsel %vm119_vm0, %v2791_v56, 0.0 }
0x1342   :  { %2803 = vadd.xlane.f32.xlu1 %v2802_v7  ;;  %v2793_v32 = vadd.f32 %v2789_v51, %v2785_v10 }
0x1344   :  { %v2808_v57 = vsel %vm119_vm0, %v2793_v32, 0.0 }
0x1346   :  { %2809 = vadd.xlane.f32.xlu1 %v2808_v57 }
0x13ca   :  { %v2801_v58 = vpop.xlane.xlu0 %2800 }
0x13cb   :  { %v2811_v62 = vmul.f32 0.03125, %v2801_v58 }
0x13cd   :  { %v2815_v59 = vsub.f32 %v2790_v53, %v2811_v62 }
0x13ce   :  { %v2807_v6 = vpop.xlane.xlu0 %2806 }
0x13cf   :  { %v2813_v0 = vmul.f32 0.03125, %v2807_v6  ;;  %v2804_v4 = vpop.xlane.xlu1 %2803  ;;  %v2819_v1 = vmul.f32 %v2815_v59, %v2815_v59 }
0x13d0   :  { %v2812_v8 = vmul.f32 0.03125, %v2804_v4 }
0x13d1   :  { %v2817_v9 = vsub.f32 %v2792_v31, %v2813_v0  ;;  %v2823_v13 = vsel %vm119_vm0, %v2819_v1, 0.0  ;;  %v2795_v31 = vld [vmem:[#allocation6 + $0x32] sm:$0xff] }
0x13d2   :  { %v2816_v14 = vsub.f32 %v2791_v56, %v2812_v8  ;;  %2824 = vadd.xlane.f32.xlu0 %v2823_v13 }
0x13d3   :  { %v2810_v23 = vpop.xlane.xlu1 %2809  ;;  %v2821_v15 = vmul.f32 %v2817_v9, %v2817_v9 }
0x13d4   :  { %v2814_v16 = vmul.f32 0.03125, %v2810_v23  ;;  %v2820_v63 = vmul.f32 %v2816_v14, %v2816_v14 }
0x13d5   :  { %v2829_v17 = vsel %vm119_vm0, %v2821_v15, 0.0 }
0x13d6   :  { %v2818_v18 = vsub.f32 %v2793_v32, %v2814_v16  ;;  %2830 = vadd.xlane.f32.xlu0 %v2829_v17  ;;  %v2826_v60 = vsel %vm119_vm0, %v2820_v63, 0.0 }
0x13d7   :  { %2827 = vadd.xlane.f32.xlu1 %v2826_v60 }
0x13d8   :  { %v2822_v19 = vmul.f32 %v2818_v18, %v2818_v18 }
0x13da   :  { %v2832_v22 = vsel %vm119_vm0, %v2822_v19, 0.0 }
0x13db   :  { %2833 = vadd.xlane.f32.xlu1 %v2832_v22 }
0x145f   :  { %v2825_v28 = vpop.xlane.xlu0 %2824 }
0x1460   :  { %v2835_v29 = vmul.f32 0.03125, %v2825_v28 }
0x1462   :  { %v2839_v30 = vadd.f32 1e-05, %v2835_v29 }
0x1463   :  { %v2831_v35 = vpop.xlane.xlu0 %2830 }
0x1464   :  { %3842 = vrsqrt.f32 %v2839_v30  ;;  %v2837_v37 = vmul.f32 0.03125, %v2831_v35  ;;  %v2828_v39 = vpop.xlane.xlu1 %2827 }
0x1465   :  { %v2836_v48 = vmul.f32 0.03125, %v2828_v39 }
0x1466   :  { %v2841_v40 = vadd.f32 1e-05, %v2837_v37 }
0x1467   :  { %v2840_v41 = vadd.f32 1e-05, %v2836_v48 }
0x1468   :  { %3844 = vrsqrt.f32 %v2841_v40  ;;  %v2834_v27 = vpop.xlane.xlu1 %2833 }
0x1469   :  { %3846 = vrsqrt.f32 %v2840_v41  ;;  %v2838_v20 = vmul.f32 0.03125, %v2834_v27 }
0x146b   :  { %v2842_v42 = vadd.f32 1e-05, %v2838_v20 }
0x146d   :  { %3848 = vrsqrt.f32 %v2842_v42 }
0x146e   :  { %v3843_v34 = vpop.eup %3842 }
0x146f   :  { %v2847_v38 = vmul.f32 %v3843_v34, %v2815_v59 }
0x1471   :  { %v2855_v46 = vmul.f32 %v2854_v36, %v2847_v38 }
0x1472   :  { %v3845_v21 = vpop.eup %3844 }
0x1473   :  { %v3847_v44 = vpop.eup %3846  ;;  %v2849_v50 = vmul.f32 %v3845_v21, %v2817_v9  ;;  %v2863_v5 = vadd.f32 %v2862_v49, %v2855_v46 }
0x1474   :  { %v2848_v45 = vmul.f32 %v3847_v44, %v2816_v14 }
0x1475   :  { %v2857_v47 = vmul.f32 %v2854_v36, %v2849_v50 }
0x1476   :  { %v2856_v51 = vmul.f32 %v2854_v36, %v2848_v45 }
0x1477   :  { %v3849_v24 = vpop.eup %3848  ;;  %v2865_v54 = vadd.f32 %v2862_v49, %v2857_v47 }
0x1478   :  { %v2864_v52 = vadd.f32 %v2862_v49, %v2856_v51  ;;  %v2850_v53 = vmul.f32 %v3849_v24, %v2818_v18 }
0x147a   :  { %v3640_v25 = vpack.c.bf16 %v2864_v52, %v2863_v5  ;;  %v2858_v2 = vmul.f32 %v2854_v36, %v2850_v53 }
0x147c   :  { %3641 = vmatprep.subr.bf16.mxu0 %v3640_v25  ;;  %v2866_v55 = vadd.f32 %v2862_v49, %v2858_v2 }
0x147d   :  { %3643 = vmatpush3.bf16.msra.mxu0 %v3640_v25 }
0x147e   :  { %v3644_v11 = vpack.c.bf16 %v2866_v55, %v2865_v54 }
0x1480   :  { %3645 = vmatprep.subr.bf16.mxu0 %v3644_v11 }
0x1481   :  { %3647 = vmatpush3.bf16.msra.mxu0 %v3644_v11 }
0x1484   :  { %3542 = vmatmul.mubr.msk.f32.vlgmr.msra.gmra.mrb[48].mxu0 %vm119_vm0, %v2798_v43 }
0x1557   :  { %v3543_v61 = vpop.f32.mrb[48].mxu0 }
0x1558   :  { %v2945_v56 = vadd.f32 %v3543_v61, %v2796_v33  ;;  %v2939_v3 = vpop.f32.mrb[49].mxu0 }
0x1559   :  { %v2940_v10 = vadd.f32 %v2939_v3, %v2795_v31 }
0x155a   :  { %2950 = vst.msk [vmem:[%s4500_s3 + $0x8] sm:$0xf] %vm2949_vm6, %v2945_v56 }
0x155b   :  { %2948 = vst.msk [vmem:[%s4500_s3] sm:$0xff] %vm119_vm0, %v2940_v10 }
0x155c   :  { %2955 = vsyncpa [#allocation3], 1 }
0x155d   :  { %2956 = vsyncpa [#allocation5], 1 }

</bundles_post_ra>
